<compile_context>
chip_gen: v7x
topology: tpu7x:2x2x1
jax: 0.10.0
libtpu: 0.0.40
codegen_flags: <defaults>
</compile_context>

<pallas_src>
import functools

import jax
import jax.numpy as jnp
from jax import lax
from jax.experimental import pallas as pl
from jax.experimental.pallas import tpu as pltpu

BN_EPS = 1e-5
_LANE = 128
_SUBLANE = 8


def _round_up(n, m):
    return -(-n // m) * m


# ----------------------------------------------------------------------------- kernel


def cbm_soft_kernel(
    x_ref,                       # [TB, D_in]
    w0_ref, b0_ref,              # fc0
    w1_ref, b1_ref,              # fc1 (BN0 folded in)
    w2_ref, b2_ref,              # fc2 (BN1 folded in)
    wcy_ref, bcy_ref,            # fused [concept_predictor | head], BN2 folded in, lane-padded
    out_ref,                     # [rows, TB]  transposed slab: rows 0..K-1 = sigmoid(c_logit),
                                 #             rows K..K+P-1 = y_logits, remaining rows = 0
    *, num_concepts,
):
    def dense_relu(z, w_r, b_r):
        zc = z.astype(w_r.dtype)  # bf16 (or f32) MXU operands, f32 accumulation
        h = jnp.dot(zc, w_r[...], preferred_element_type=jnp.float32) + b_r[...]
        return jnp.maximum(h, 0.0)          # ReLU (Dropout == identity in eval)

    h = dense_relu(x_ref[...], w0_ref, b0_ref)
    h = dense_relu(h, w1_ref, b1_ref)
    h = dense_relu(h, w2_ref, b2_ref)

    # Single lane-dense matmul producing [c_logit | y_logits | 0-pad] (width = 128 multiple).
    logits = jnp.dot(h.astype(wcy_ref.dtype), wcy_ref[...],
                     preferred_element_type=jnp.float32) + bcy_ref[...]

    # Transposed, sublane-narrow writeback: only ~16 sublanes (lane dim = batch) hit HBM
    # instead of a 128-wide f32 slab that is ~90% padding. The transpose uses the idle XLU.
    rows = out_ref.shape[0]
    t = logits.T[:rows, :]
    row = lax.broadcasted_iota(jnp.int32, t.shape, 0)
    # Rows beyond a ragged batch tile hold garbage that flows through sigmoid; harmless —
    # all math is row/lane-wise and out-of-range lanes are dropped on store. Do not mask.
    out_ref[...] = jnp.where(row < num_concepts, jax.nn.sigmoid(t), t)


# ----------------------------------------------------------------------------- param folding


def prepare_cbm_params(params, *, use_bf16=True):
    """Fold eval-mode BatchNorm into the following layer, fuse the linear head, pad & cast.

    Exact f32 constant folding done ONCE; cache the returned dict and pass it to
    `cbm_soft_forward(..., folded_params=...)` to keep this work off the per-call path.
    """
    def bn_scale_shift(bnp):
        gamma, beta, mean, var = bnp[0], bnp[1], bnp[2], bnp[3]   # each [1, H]
        scale = gamma * lax.rsqrt(var + BN_EPS)
        shift = beta - mean * scale
        return scale, shift                                        # z_bn = h*scale + shift

    s0, t0 = bn_scale_shift(params["bn0"])
    s1, t1 = bn_scale_shift(params["bn1"])
    s2, t2 = bn_scale_shift(params["bn2"])

    # (h*s + t) @ W + b  ==  h @ (s^T * W) + (t @ W + b)
    w0, b0 = params["w0T"], params["b0"]
    w1 = s0.T * params["w1T"]
    b1 = t0 @ params["w1T"] + params["b1"]
    w2 = s1.T * params["w2T"]
    b2 = t1 @ params["w2T"] + params["b2"]
    wc = s2.T * params["wcT"]
    bc = t2 @ params["wcT"] + params["bc"]

    # Fuse head:  y = (z@Wc + bc)@Wy + by = z@(Wc@Wy) + (bc@Wy + by)
    wy, by = params["wyT"], params["by"]
    wcy = jnp.concatenate([wc, wc @ wy], axis=1)      # [H, K+P]
    bcy = jnp.concatenate([bc, bc @ wy + by], axis=1)  # [1, K+P]

    K = wc.shape[1]
    P = wy.shape[1]
    KP = _round_up(K + P, _LANE)                      # lane-dense matmul width
    wcy = jnp.pad(wcy, ((0, 0), (0, KP - (K + P))))
    bcy = jnp.pad(bcy, ((0, 0), (0, KP - (K + P))))

    # bf16 weights + bf16 MXU operands with f32 accumulation (elementwise math stays f32).
    wdt = jnp.bfloat16 if use_bf16 else jnp.float32
    return dict(
        w0=w0.astype(wdt), b0=b0,
        w1=w1.astype(wdt), b1=b1,
        w2=w2.astype(wdt), b2=b2,
        wcy=wcy.astype(wdt), bcy=bcy,
        num_concepts=K, pred_dim=P,
    )


# ----------------------------------------------------------------------------- tiling helpers


def _num_tensorcores():
    """Best-effort TensorCore-per-device count (2 only on megacore parts / v7x)."""
    try:
        kind = jax.devices()[0].device_kind.lower()
    except Exception:
        return 1
    if any(tag in kind for tag in ("v5e", "v5 lite", "v6e", "v6 lite")):
        return 1
    if any(tag in kind for tag in ("v7", "v4", "v5p")):
        return 2
    return 1


def _choose_batch_tile(B, batch_tile, num_cores):
    if batch_tile >= B:
        tb = B                                           # single full block
    else:
        # Tiles smaller than B must be multiples of 128: the batch dim is the lane
        # (last) dim of the transposed output block.
        tb = min(_round_up(B, _LANE), max(_LANE, _round_up(batch_tile, _LANE)))
        if tb >= B:
            tb = B
    # Only on 2-TensorCore devices: aim for >= 4 "parallel" grid steps so the megacore
    # split load-balances (on 1-TC parts extra steps are pure overhead).
    if num_cores >= 2 and B >= 4 * _LANE:
        while pl.cdiv(B, tb) < 4 and tb > _LANE:
            tb = max(_LANE, _round_up(tb // 2, _LANE))
    return tb


def _const_index_map(nd):
    def index_map(i):
        return (0,) * nd
    return index_map


# ----------------------------------------------------------------------------- forward


def cbm_soft_forward(x, params=None, *, folded_params=None, batch_tile=1024,
                     use_bf16=True, single_buffer_weights=True):
    """Fused soft-CBM forward (eval mode). x: [B, D_in]. Returns (c_prob, y_pred_logits, c).

    Pass `folded_params=prepare_cbm_params(params)` to reuse the one-time folding across calls.
    """
    fp = folded_params if folded_params is not None else prepare_cbm_params(
        params, use_bf16=use_bf16)

    B, D_in = x.shape
    K = fp["num_concepts"]
    P = fp["pred_dim"]
    H = fp["w0"].shape[1]
    KP = fp["wcy"].shape[1]
    rows = _round_up(K + P, _SUBLANE)                    # transposed output sublane height

    TB = _choose_batch_tile(B, batch_tile, _num_tensorcores())
    grid = (pl.cdiv(B, TB),)

    weight_arrays = (fp["w0"], fp["b0"], fp["w1"], fp["b1"], fp["w2"], fp["b2"],
                     fp["wcy"], fp["bcy"])
    wbytes = sum(int(a.size) * a.dtype.itemsize for a in weight_arrays)
    cost = pl.CostEstimate(
        flops=2 * B * (D_in * H + 2 * H * H + H * KP),
        transcendentals=B * K,
        bytes_accessed=B * D_in * x.dtype.itemsize + wbytes + B * rows * 4,
    )

    def run(single_buffer):
        def const_spec(arr):
            # Constant index map: block resident across grid steps. Single-buffer it so the
            # invariant parameters don't pay a second pipeline buffer / redundant prologue DMA.
            if single_buffer:
                return pl.BlockSpec(arr.shape, _const_index_map(arr.ndim),
                                    pipeline_mode=pl.Buffered(1))
            return pl.BlockSpec(arr.shape, _const_index_map(arr.ndim))

        grid_spec = pltpu.PrefetchScalarGridSpec(
            num_scalar_prefetch=0,
            grid=grid,
            in_specs=[pl.BlockSpec((TB, D_in), lambda i: (i, 0))]
                     + [const_spec(a) for a in weight_arrays],
            out_specs=pl.BlockSpec((rows, TB), lambda i: (0, i)),
        )
        return pl.pallas_call(
            functools.partial(cbm_soft_kernel, num_concepts=K),
            out_shape=jax.ShapeDtypeStruct((rows, B), jnp.float32),
            grid_spec=grid_spec,
            compiler_params=pltpu.CompilerParams(dimension_semantics=("parallel",)),
            cost_estimate=cost,
        )(x, *weight_arrays)

    if single_buffer_weights:
        try:
            out_t = run(True)
        except Exception:      # conservative fallback if Buffered(1) is rejected
            out_t = run(False)
    else:
        out_t = run(False)

    c_prob = out_t[:K, :].T
    y_pred_logits = out_t[K:K + P, :].T
    # PyTorch returns torch.empty_like(c_prob) (uninitialized); emit zeros deterministically.
    c = jnp.zeros_like(c_prob)
    return c_prob, y_pred_logits, c


# ----------------------------------------------------------------------------- params & reference


def init_params(key, *, num_covariates, num_hidden, num_concepts, pred_dim):
    """Deterministic synthetic parameters matching the PyTorch module's shapes."""
    ks = jax.random.split(key, 16)

    def linear(kw, kb, fan_in, fan_out):
        bound = 1.0 / jnp.sqrt(fan_in)
        wT = jax.random.uniform(kw, (fan_in, fan_out), jnp.float32, -bound, bound)
        b = jax.random.uniform(kb, (1, fan_out), jnp.float32, -bound, bound)
        return wT, b

    def bn(kg, kb, km, kv, n):
        gamma = 1.0 + 0.1 * jax.random.normal(kg, (1, n), jnp.float32)
        beta = 0.1 * jax.random.normal(kb, (1, n), jnp.float32)
        mean = 0.1 * jax.random.normal(km, (1, n), jnp.float32)
        var = 0.5 + jnp.abs(jax.random.normal(kv, (1, n), jnp.float32))
        return jnp.stack([gamma, beta, mean, var], axis=0)  # [4, 1, n]

    w0T, b0 = linear(ks[0], ks[1], num_covariates, num_hidden)
    w1T, b1 = linear(ks[2], ks[3], num_hidden, num_hidden)
    w2T, b2 = linear(ks[4], ks[5], num_hidden, num_hidden)
    wcT, bc = linear(ks[6], ks[7], num_hidden, num_concepts)
    wyT, by = linear(ks[8], ks[9], num_concepts, pred_dim)
    bn_keys = jax.random.split(ks[10], 12)
    bn0 = bn(*bn_keys[0:4], num_hidden)
    bn1 = bn(*bn_keys[4:8], num_hidden)
    bn2 = bn(*bn_keys[8:12], num_hidden)
    return dict(
        w0T=w0T, b0=b0, bn0=bn0,
        w1T=w1T, b1=b1, bn1=bn1,
        w2T=w2T, b2=b2, bn2=bn2,
        wcT=wcT, bc=bc, wyT=wyT, by=by,
    )


def cbm_soft_reference(x, p):
    """Pure-JAX reference following the original (unfused) PyTorch eval-mode math."""
    def layer(z, wT, b, bnp):
        h = jnp.maximum(z @ wT + b, 0.0)
        gamma, beta, mean, var = bnp[0], bnp[1], bnp[2], bnp[3]
        return (h - mean) * (gamma / jnp.sqrt(var + BN_EPS)) + beta

    z = layer(x, p["w0T"], p["b0"], p["bn0"])
    z = layer(z, p["w1T"], p["b1"], p["bn1"])
    z = layer(z, p["w2T"], p["b2"], p["bn2"])
    c_logit = z @ p["wcT"] + p["bc"]
    c_prob = jax.nn.sigmoid(c_logit)
    y = c_logit @ p["wyT"] + p["by"]
    return c_prob, y


# ----------------------------------------------------------------------------- main


if __name__ == "__main__":
    # Small shapes consistent with the module (FCNN encoder hard-codes n_features=256).
    batch = 8
    num_covariates = 32
    num_hidden = 256
    num_concepts = 8
    num_classes = 4           # > 2  ->  pred_dim = num_classes
    pred_dim = num_classes

    key = jax.random.PRNGKey(0)
    k_x, k_p, k_x2 = jax.random.split(key, 3)
    x = jax.random.normal(k_x, (batch, num_covariates), jnp.float32)
    params = init_params(k_p, num_covariates=num_covariates, num_hidden=num_hidden,
                         num_concepts=num_concepts, pred_dim=pred_dim)

    c_prob_ref, y_ref = cbm_soft_reference(x, params)

    # f32 path: tight check (validates BN folding + head fusion + transposed narrow writeback).
    c32, y32, cc32 = cbm_soft_forward(x, params, use_bf16=False)
    jax.block_until_ready((c32, y32, cc32))
    assert c32.shape == (batch, num_concepts)
    assert y32.shape == (batch, pred_dim)
    assert cc32.shape == (batch, num_concepts)
    assert jnp.allclose(c32, c_prob_ref, atol=1e-4, rtol=1e-4)
    assert jnp.allclose(y32, y_ref, atol=5e-4, rtol=5e-4)

    # Default fast path: fold the parameters ONCE and reuse across calls (bf16 operands,
    # f32 accumulation).  Looser tolerances vs. the f32 reference.
    folded = prepare_cbm_params(params, use_bf16=True)
    c_prob, y_pred_logits, c = cbm_soft_forward(x, folded_params=folded)
    jax.block_until_ready((c_prob, y_pred_logits, c))
    assert c_prob.shape == (batch, num_concepts)
    assert y_pred_logits.shape == (batch, pred_dim)
    assert c.shape == (batch, num_concepts)
    assert jnp.allclose(c_prob, c_prob_ref, atol=3e-2, rtol=3e-2)
    assert jnp.allclose(y_pred_logits, y_ref, atol=5e-2, rtol=5e-2)

    # Multi-step grid with a ragged last batch tile (exercises pipelining + partial blocks).
    batch_big = 300
    xb = jax.random.normal(k_x2, (batch_big, num_covariates), jnp.float32)
    c_ref_b, y_ref_b = cbm_soft_reference(xb, params)
    c_b, y_b, _ = cbm_soft_forward(xb, folded_params=folded, batch_tile=128)
    jax.block_until_ready((c_b, y_b))
    assert c_b.shape == (batch_big, num_concepts)
    assert y_b.shape == (batch_big, pred_dim)
    assert jnp.allclose(c_b, c_ref_b, atol=3e-2, rtol=3e-2)
    assert jnp.allclose(y_b, y_ref_b, atol=5e-2, rtol=5e-2)

    print("KERNEL_OK")
</pallas_src>

<mosaic_0001>
module attributes {stable_mosaic.version = 11 : i64} {
  func.func @cbm_soft_kernel(%arg0: i32, %arg1: memref<8x32xf32, #tpu.memory_space<vmem>>, %arg2: memref<32x256xf32, #tpu.memory_space<vmem>>, %arg3: memref<1x256xf32, #tpu.memory_space<vmem>>, %arg4: memref<256x256xf32, #tpu.memory_space<vmem>>, %arg5: memref<1x256xf32, #tpu.memory_space<vmem>>, %arg6: memref<256x256xf32, #tpu.memory_space<vmem>>, %arg7: memref<1x256xf32, #tpu.memory_space<vmem>>, %arg8: memref<256x128xf32, #tpu.memory_space<vmem>>, %arg9: memref<1x128xf32, #tpu.memory_space<vmem>>, %arg10: memref<16x8xf32, #tpu.memory_space<vmem>>) attributes {dimension_semantics = [#tpu.dimension_semantics<parallel>], iteration_bounds = array<i64: 1>, scalar_prefetch = 0 : i64, scratch_operands = 0 : i64, tpu.core_type = #tpu.core_type<tc>, window_params = [{transform_indices = @transform_0, window_bounds = array<i64: 8, 32>}, {pipeline_mode = #tpu.pipeline_mode<synchronous>, transform_indices = @transform_1, window_bounds = array<i64: 32, 256>}, {pipeline_mode = #tpu.pipeline_mode<synchronous>, transform_indices = @transform_2, window_bounds = array<i64: 1, 256>}, {pipeline_mode = #tpu.pipeline_mode<synchronous>, transform_indices = @transform_3, window_bounds = array<i64: 256, 256>}, {pipeline_mode = #tpu.pipeline_mode<synchronous>, transform_indices = @transform_4, window_bounds = array<i64: 1, 256>}, {pipeline_mode = #tpu.pipeline_mode<synchronous>, transform_indices = @transform_5, window_bounds = array<i64: 256, 256>}, {pipeline_mode = #tpu.pipeline_mode<synchronous>, transform_indices = @transform_6, window_bounds = array<i64: 1, 256>}, {pipeline_mode = #tpu.pipeline_mode<synchronous>, transform_indices = @transform_7, window_bounds = array<i64: 256, 128>}, {pipeline_mode = #tpu.pipeline_mode<synchronous>, transform_indices = @transform_8, window_bounds = array<i64: 1, 128>}, {transform_indices = @transform_9, window_bounds = array<i64: 16, 8>}]} {
    %c0 = arith.constant 0 : index
    %c0_0 = arith.constant 0 : index
    %0 = vector.load %arg1[%c0, %c0_0] : memref<8x32xf32, #tpu.memory_space<vmem>>, vector<8x32xf32>
    %c0_1 = arith.constant 0 : index
    %c0_2 = arith.constant 0 : index
    %1 = vector.load %arg2[%c0_1, %c0_2] : memref<32x256xf32, #tpu.memory_space<vmem>>, vector<32x256xf32>
    %cst = arith.constant dense<0.000000e+00> : vector<8x256xf32>
    %2 = tpu.matmul %0, %1, %cst {dimension_numbers = #tpu.dot_dimension_numbers<[1], [0], [0], [1], [0, 0, 1, 1], [], []>} : vector<8x32xf32>, vector<32x256xf32>, vector<8x256xf32> -> vector<8x256xf32>
    %c0_3 = arith.constant 0 : index
    %c0_4 = arith.constant 0 : index
    %3 = vector.load %arg3[%c0_3, %c0_4] : memref<1x256xf32, #tpu.memory_space<vmem>>, vector<1x256xf32>
    %4 = vector.broadcast %3 : vector<1x256xf32> to vector<8x256xf32>
    %5 = arith.addf %2, %4 : vector<8x256xf32>
    %cst_5 = arith.constant 0.000000e+00 : f32
    %6 = vector.broadcast %cst_5 : f32 to vector<8x256xf32>
    %7 = arith.maximumf %5, %6 : vector<8x256xf32>
    %c0_6 = arith.constant 0 : index
    %c0_7 = arith.constant 0 : index
    %8 = vector.load %arg4[%c0_6, %c0_7] : memref<256x256xf32, #tpu.memory_space<vmem>>, vector<256x256xf32>
    %cst_8 = arith.constant dense<0.000000e+00> : vector<8x256xf32>
    %9 = tpu.matmul %7, %8, %cst_8 {dimension_numbers = #tpu.dot_dimension_numbers<[1], [0], [0], [1], [0, 0, 1, 1], [], []>} : vector<8x256xf32>, vector<256x256xf32>, vector<8x256xf32> -> vector<8x256xf32>
    %c0_9 = arith.constant 0 : index
    %c0_10 = arith.constant 0 : index
    %10 = vector.load %arg5[%c0_9, %c0_10] : memref<1x256xf32, #tpu.memory_space<vmem>>, vector<1x256xf32>
    %11 = vector.broadcast %10 : vector<1x256xf32> to vector<8x256xf32>
    %12 = arith.addf %9, %11 : vector<8x256xf32>
    %cst_11 = arith.constant 0.000000e+00 : f32
    %13 = vector.broadcast %cst_11 : f32 to vector<8x256xf32>
    %14 = arith.maximumf %12, %13 : vector<8x256xf32>
    %c0_12 = arith.constant 0 : index
    %c0_13 = arith.constant 0 : index
    %15 = vector.load %arg6[%c0_12, %c0_13] : memref<256x256xf32, #tpu.memory_space<vmem>>, vector<256x256xf32>
    %cst_14 = arith.constant dense<0.000000e+00> : vector<8x256xf32>
    %16 = tpu.matmul %14, %15, %cst_14 {dimension_numbers = #tpu.dot_dimension_numbers<[1], [0], [0], [1], [0, 0, 1, 1], [], []>} : vector<8x256xf32>, vector<256x256xf32>, vector<8x256xf32> -> vector<8x256xf32>
    %c0_15 = arith.constant 0 : index
    %c0_16 = arith.constant 0 : index
    %17 = vector.load %arg7[%c0_15, %c0_16] : memref<1x256xf32, #tpu.memory_space<vmem>>, vector<1x256xf32>
    %18 = vector.broadcast %17 : vector<1x256xf32> to vector<8x256xf32>
    %19 = arith.addf %16, %18 : vector<8x256xf32>
    %cst_17 = arith.constant 0.000000e+00 : f32
    %20 = vector.broadcast %cst_17 : f32 to vector<8x256xf32>
    %21 = arith.maximumf %19, %20 : vector<8x256xf32>
    %c0_18 = arith.constant 0 : index
    %c0_19 = arith.constant 0 : index
    %22 = vector.load %arg8[%c0_18, %c0_19] : memref<256x128xf32, #tpu.memory_space<vmem>>, vector<256x128xf32>
    %cst_20 = arith.constant dense<0.000000e+00> : vector<8x128xf32>
    %23 = tpu.matmul %21, %22, %cst_20 {dimension_numbers = #tpu.dot_dimension_numbers<[1], [0], [0], [1], [0, 0, 1, 1], [], []>} : vector<8x256xf32>, vector<256x128xf32>, vector<8x128xf32> -> vector<8x128xf32>
    %c0_21 = arith.constant 0 : index
    %c0_22 = arith.constant 0 : index
    %24 = vector.load %arg9[%c0_21, %c0_22] : memref<1x128xf32, #tpu.memory_space<vmem>>, vector<1x128xf32>
    %25 = vector.broadcast %24 : vector<1x128xf32> to vector<8x128xf32>
    %26 = arith.addf %23, %25 : vector<8x128xf32>
    %27 = tpu.transpose %26, [1, 0] : vector<8x128xf32> -> vector<128x8xf32>
    %28 = vector.extract_strided_slice %27 {offsets = [0, 0], sizes = [16, 8], strides = [1, 1]} : vector<128x8xf32> to vector<16x8xf32>
    %29 = tpu.iota {dimensions = array<i32: 0>} : vector<16x8xi32>
    %c8_i32 = arith.constant 8 : i32
    %30 = vector.broadcast %c8_i32 : i32 to vector<16x8xi32>
    %31 = arith.cmpi slt, %29, %30 : vector<16x8xi32>
    %32 = arith.negf %28 : vector<16x8xf32>
    %33 = math.exp %32 : vector<16x8xf32>
    %cst_23 = arith.constant 1.000000e+00 : f32
    %34 = vector.broadcast %cst_23 : f32 to vector<16x8xf32>
    %35 = arith.addf %34, %33 : vector<16x8xf32>
    %36 = arith.divf %34, %35 : vector<16x8xf32>
    %37 = arith.select %31, %36, %28 : vector<16x8xi1>, vector<16x8xf32>
    %c0_24 = arith.constant 0 : index
    %c0_25 = arith.constant 0 : index
    %38 = vector.load %arg10[%c0_24, %c0_25] : memref<16x8xf32, #tpu.memory_space<vmem>>, vector<16x8xf32>
    tpu.vector_store %arg10[%c0_24, %c0_25], %37 {strides = array<i32>} : memref<16x8xf32, #tpu.memory_space<vmem>>, vector<16x8xf32>,
    return
  }
  func.func @transform_0(%arg0: i32) -> (i32, i32) {
    %c0_i32 = arith.constant 0 : i32
    %c0_i32_0 = arith.constant 0 : i32
    return %arg0, %c0_i32 : i32, i32
  }
  func.func @transform_1(%arg0: i32) -> (i32, i32) {
    %c0_i32 = arith.constant 0 : i32
    %c0_i32_0 = arith.constant 0 : i32
    %c0_i32_1 = arith.constant 0 : i32
    return %c0_i32, %c0_i32_0 : i32, i32
  }
  func.func @transform_2(%arg0: i32) -> (i32, i32) {
    %c0_i32 = arith.constant 0 : i32
    %c0_i32_0 = arith.constant 0 : i32
    %c0_i32_1 = arith.constant 0 : i32
    return %c0_i32, %c0_i32_0 : i32, i32
  }
  func.func @transform_3(%arg0: i32) -> (i32, i32) {
    %c0_i32 = arith.constant 0 : i32
    %c0_i32_0 = arith.constant 0 : i32
    %c0_i32_1 = arith.constant 0 : i32
    return %c0_i32, %c0_i32_0 : i32, i32
  }
  func.func @transform_4(%arg0: i32) -> (i32, i32) {
    %c0_i32 = arith.constant 0 : i32
    %c0_i32_0 = arith.constant 0 : i32
    %c0_i32_1 = arith.constant 0 : i32
    return %c0_i32, %c0_i32_0 : i32, i32
  }
  func.func @transform_5(%arg0: i32) -> (i32, i32) {
    %c0_i32 = arith.constant 0 : i32
    %c0_i32_0 = arith.constant 0 : i32
    %c0_i32_1 = arith.constant 0 : i32
    return %c0_i32, %c0_i32_0 : i32, i32
  }
  func.func @transform_6(%arg0: i32) -> (i32, i32) {
    %c0_i32 = arith.constant 0 : i32
    %c0_i32_0 = arith.constant 0 : i32
    %c0_i32_1 = arith.constant 0 : i32
    return %c0_i32, %c0_i32_0 : i32, i32
  }
  func.func @transform_7(%arg0: i32) -> (i32, i32) {
    %c0_i32 = arith.constant 0 : i32
    %c0_i32_0 = arith.constant 0 : i32
    %c0_i32_1 = arith.constant 0 : i32
    return %c0_i32, %c0_i32_0 : i32, i32
  }
  func.func @transform_8(%arg0: i32) -> (i32, i32) {
    %c0_i32 = arith.constant 0 : i32
    %c0_i32_0 = arith.constant 0 : i32
    %c0_i32_1 = arith.constant 0 : i32
    return %c0_i32, %c0_i32_0 : i32, i32
  }
  func.func @transform_9(%arg0: i32) -> (i32, i32) {
    %c0_i32 = arith.constant 0 : i32
    %c0_i32_0 = arith.constant 0 : i32
    return %c0_i32, %arg0 : i32, i32
  }
}

module attributes {stable_mosaic.version = 11 : i64} {
  func.func @cbm_soft_kernel(%arg0: i32, %arg1: memref<8x32xf32, #tpu.memory_space<vmem>>, %arg2: memref<32x256xf32, #tpu.memory_space<vmem>>, %arg3: memref<1x256xf32, #tpu.memory_space<vmem>>, %arg4: memref<256x256xf32, #tpu.memory_space<vmem>>, %arg5: memref<1x256xf32, #tpu.memory_space<vmem>>, %arg6: memref<256x256xf32, #tpu.memory_space<vmem>>, %arg7: memref<1x256xf32, #tpu.memory_space<vmem>>, %arg8: memref<256x128xf32, #tpu.memory_space<vmem>>, %arg9: memref<1x128xf32, #tpu.memory_space<vmem>>, %arg10: memref<16x8xf32, #tpu.memory_space<vmem>>) attributes {dimension_semantics = [#tpu.dimension_semantics<parallel>], iteration_bounds = array<i64: 1>, scalar_prefetch = 0 : i64, scratch_operands = 0 : i64, tpu.core_type = #tpu.core_type<tc>, window_params = [{transform_indices = @transform_0, window_bounds = array<i64: 8, 32>}, {pipeline_mode = #tpu.pipeline_mode<synchronous>, transform_indices = @transform_1, window_bounds = array<i64: 32, 256>}, {pipeline_mode = #tpu.pipeline_mode<synchronous>, transform_indices = @transform_2, window_bounds = array<i64: 1, 256>}, {pipeline_mode = #tpu.pipeline_mode<synchronous>, transform_indices = @transform_3, window_bounds = array<i64: 256, 256>}, {pipeline_mode = #tpu.pipeline_mode<synchronous>, transform_indices = @transform_4, window_bounds = array<i64: 1, 256>}, {pipeline_mode = #tpu.pipeline_mode<synchronous>, transform_indices = @transform_5, window_bounds = array<i64: 256, 256>}, {pipeline_mode = #tpu.pipeline_mode<synchronous>, transform_indices = @transform_6, window_bounds = array<i64: 1, 256>}, {pipeline_mode = #tpu.pipeline_mode<synchronous>, transform_indices = @transform_7, window_bounds = array<i64: 256, 128>}, {pipeline_mode = #tpu.pipeline_mode<synchronous>, transform_indices = @transform_8, window_bounds = array<i64: 1, 128>}, {transform_indices = @transform_9, window_bounds = array<i64: 16, 8>}]} {
    %c0 = arith.constant 0 : index
    %c0_0 = arith.constant 0 : index
    %0 = vector.load %arg1[%c0, %c0_0] : memref<8x32xf32, #tpu.memory_space<vmem>>, vector<8x32xf32>
    %c0_1 = arith.constant 0 : index
    %c0_2 = arith.constant 0 : index
    %1 = vector.load %arg2[%c0_1, %c0_2] : memref<32x256xf32, #tpu.memory_space<vmem>>, vector<32x256xf32>
    %cst = arith.constant dense<0.000000e+00> : vector<8x256xf32>
    %2 = tpu.matmul %0, %1, %cst {dimension_numbers = #tpu.dot_dimension_numbers<[1], [0], [0], [1], [0, 0, 1, 1], [], []>} : vector<8x32xf32>, vector<32x256xf32>, vector<8x256xf32> -> vector<8x256xf32>
    %c0_3 = arith.constant 0 : index
    %c0_4 = arith.constant 0 : index
    %3 = vector.load %arg3[%c0_3, %c0_4] : memref<1x256xf32, #tpu.memory_space<vmem>>, vector<1x256xf32>
    %4 = vector.broadcast %3 : vector<1x256xf32> to vector<8x256xf32>
    %5 = arith.addf %2, %4 : vector<8x256xf32>
    %cst_5 = arith.constant 0.000000e+00 : f32
    %6 = vector.broadcast %cst_5 : f32 to vector<8x256xf32>
    %7 = arith.maximumf %5, %6 : vector<8x256xf32>
    %c0_6 = arith.constant 0 : index
    %c0_7 = arith.constant 0 : index
    %8 = vector.load %arg4[%c0_6, %c0_7] : memref<256x256xf32, #tpu.memory_space<vmem>>, vector<256x256xf32>
    %cst_8 = arith.constant dense<0.000000e+00> : vector<8x256xf32>
    %9 = tpu.matmul %7, %8, %cst_8 {dimension_numbers = #tpu.dot_dimension_numbers<[1], [0], [0], [1], [0, 0, 1, 1], [], []>} : vector<8x256xf32>, vector<256x256xf32>, vector<8x256xf32> -> vector<8x256xf32>
    %c0_9 = arith.constant 0 : index
    %c0_10 = arith.constant 0 : index
    %10 = vector.load %arg5[%c0_9, %c0_10] : memref<1x256xf32, #tpu.memory_space<vmem>>, vector<1x256xf32>
    %11 = vector.broadcast %10 : vector<1x256xf32> to vector<8x256xf32>
    %12 = arith.addf %9, %11 : vector<8x256xf32>
    %cst_11 = arith.constant 0.000000e+00 : f32
    %13 = vector.broadcast %cst_11 : f32 to vector<8x256xf32>
    %14 = arith.maximumf %12, %13 : vector<8x256xf32>
    %c0_12 = arith.constant 0 : index
    %c0_13 = arith.constant 0 : index
    %15 = vector.load %arg6[%c0_12, %c0_13] : memref<256x256xf32, #tpu.memory_space<vmem>>, vector<256x256xf32>
    %cst_14 = arith.constant dense<0.000000e+00> : vector<8x256xf32>
    %16 = tpu.matmul %14, %15, %cst_14 {dimension_numbers = #tpu.dot_dimension_numbers<[1], [0], [0], [1], [0, 0, 1, 1], [], []>} : vector<8x256xf32>, vector<256x256xf32>, vector<8x256xf32> -> vector<8x256xf32>
    %c0_15 = arith.constant 0 : index
    %c0_16 = arith.constant 0 : index
    %17 = vector.load %arg7[%c0_15, %c0_16] : memref<1x256xf32, #tpu.memory_space<vmem>>, vector<1x256xf32>
    %18 = vector.broadcast %17 : vector<1x256xf32> to vector<8x256xf32>
    %19 = arith.addf %16, %18 : vector<8x256xf32>
    %cst_17 = arith.constant 0.000000e+00 : f32
    %20 = vector.broadcast %cst_17 : f32 to vector<8x256xf32>
    %21 = arith.maximumf %19, %20 : vector<8x256xf32>
    %c0_18 = arith.constant 0 : index
    %c0_19 = arith.constant 0 : index
    %22 = vector.load %arg8[%c0_18, %c0_19] : memref<256x128xf32, #tpu.memory_space<vmem>>, vector<256x128xf32>
    %cst_20 = arith.constant dense<0.000000e+00> : vector<8x128xf32>
    %23 = tpu.matmul %21, %22, %cst_20 {dimension_numbers = #tpu.dot_dimension_numbers<[1], [0], [0], [1], [0, 0, 1, 1], [], []>} : vector<8x256xf32>, vector<256x128xf32>, vector<8x128xf32> -> vector<8x128xf32>
    %c0_21 = arith.constant 0 : index
    %c0_22 = arith.constant 0 : index
    %24 = vector.load %arg9[%c0_21, %c0_22] : memref<1x128xf32, #tpu.memory_space<vmem>>, vector<1x128xf32>
    %25 = vector.broadcast %24 : vector<1x128xf32> to vector<8x128xf32>
    %26 = arith.addf %23, %25 : vector<8x128xf32>
    %27 = tpu.transpose %26, [1, 0] : vector<8x128xf32> -> vector<128x8xf32>
    %28 = vector.extract_strided_slice %27 {offsets = [0, 0], sizes = [16, 8], strides = [1, 1]} : vector<128x8xf32> to vector<16x8xf32>
    %29 = tpu.iota {dimensions = array<i32: 0>} : vector<16x8xi32>
    %c8_i32 = arith.constant 8 : i32
    %30 = vector.broadcast %c8_i32 : i32 to vector<16x8xi32>
    %31 = arith.cmpi slt, %29, %30 : vector<16x8xi32>
    %32 = arith.negf %28 : vector<16x8xf32>
    %33 = math.exp %32 : vector<16x8xf32>
    %cst_23 = arith.constant 1.000000e+00 : f32
    %34 = vector.broadcast %cst_23 : f32 to vector<16x8xf32>
    %35 = arith.addf %34, %33 : vector<16x8xf32>
    %36 = arith.divf %34, %35 : vector<16x8xf32>
    %37 = arith.select %31, %36, %28 : vector<16x8xi1>, vector<16x8xf32>
    %c0_24 = arith.constant 0 : index
    %c0_25 = arith.constant 0 : index
    %38 = vector.load %arg10[%c0_24, %c0_25] : memref<16x8xf32, #tpu.memory_space<vmem>>, vector<16x8xf32>
    tpu.vector_store %arg10[%c0_24, %c0_25], %37 {strides = array<i32>} : memref<16x8xf32, #tpu.memory_space<vmem>>, vector<16x8xf32>,
    return
  }
  func.func @transform_0(%arg0: i32) -> (i32, i32) {
    %c0_i32 = arith.constant 0 : i32
    %c0_i32_0 = arith.constant 0 : i32
    return %arg0, %c0_i32 : i32, i32
  }
  func.func @transform_1(%arg0: i32) -> (i32, i32) {
    %c0_i32 = arith.constant 0 : i32
    %c0_i32_0 = arith.constant 0 : i32
    %c0_i32_1 = arith.constant 0 : i32
    return %c0_i32, %c0_i32_0 : i32, i32
  }
  func.func @transform_2(%arg0: i32) -> (i32, i32) {
    %c0_i32 = arith.constant 0 : i32
    %c0_i32_0 = arith.constant 0 : i32
    %c0_i32_1 = arith.constant 0 : i32
    return %c0_i32, %c0_i32_0 : i32, i32
  }
  func.func @transform_3(%arg0: i32) -> (i32, i32) {
    %c0_i32 = arith.constant 0 : i32
    %c0_i32_0 = arith.constant 0 : i32
    %c0_i32_1 = arith.constant 0 : i32
    return %c0_i32, %c0_i32_0 : i32, i32
  }
  func.func @transform_4(%arg0: i32) -> (i32, i32) {
    %c0_i32 = arith.constant 0 : i32
    %c0_i32_0 = arith.constant 0 : i32
    %c0_i32_1 = arith.constant 0 : i32
    return %c0_i32, %c0_i32_0 : i32, i32
  }
  func.func @transform_5(%arg0: i32) -> (i32, i32) {
    %c0_i32 = arith.constant 0 : i32
    %c0_i32_0 = arith.constant 0 : i32
    %c0_i32_1 = arith.constant 0 : i32
    return %c0_i32, %c0_i32_0 : i32, i32
  }
  func.func @transform_6(%arg0: i32) -> (i32, i32) {
    %c0_i32 = arith.constant 0 : i32
    %c0_i32_0 = arith.constant 0 : i32
    %c0_i32_1 = arith.constant 0 : i32
    return %c0_i32, %c0_i32_0 : i32, i32
  }
  func.func @transform_7(%arg0: i32) -> (i32, i32) {
    %c0_i32 = arith.constant 0 : i32
    %c0_i32_0 = arith.constant 0 : i32
    %c0_i32_1 = arith.constant 0 : i32
    return %c0_i32, %c0_i32_0 : i32, i32
  }
  func.func @transform_8(%arg0: i32) -> (i32, i32) {
    %c0_i32 = arith.constant 0 : i32
    %c0_i32_0 = arith.constant 0 : i32
    %c0_i32_1 = arith.constant 0 : i32
    return %c0_i32, %c0_i32_0 : i32, i32
  }
  func.func @transform_9(%arg0: i32) -> (i32, i32) {
    %c0_i32 = arith.constant 0 : i32
    %c0_i32_0 = arith.constant 0 : i32
    return %c0_i32, %arg0 : i32, i32
  }
}

</mosaic_0001>

<bundles_post_ra>
// kernel: tpu_custom_call.1
= control target key start
LH: loop header
LB: loop body
LE: loop exit
PB: predicated region body
PF: predicated region fallthrough
CT: control target
= control target key end

     0   :  { %14 = vsyncpa [#allocation3], 0  ;;  %s1158_s0 = inlined_call_operand.hbm [shape: f32[8,32], index: 0, kind: input, shape index: {}]   ;;  %s1159_s1 = inlined_call_operand.hbm [shape: f32[32,256], index: 1, kind: input, shape index: {}]   ;;  %s1160_s2 = inlined_call_operand.vmem [shape: f32[1,256], index: 2, kind: input, shape index: {}]   ;;  %s1161_s3 = inlined_call_operand.hbm [shape: f32[256,256], index: 3, kind: input, shape index: {}]   ;;  %s1162_s4 = inlined_call_operand.vmem [shape: f32[1,256], index: 4, kind: input, shape index: {}]   ;;  %s1163_s5 = inlined_call_operand.hbm [shape: f32[256,256], index: 5, kind: input, shape index: {}]   ;;  %s1164_s6 = inlined_call_operand.vmem [shape: f32[1,256], index: 6, kind: input, shape index: {}]   ;;  %s1165_s7 = inlined_call_operand.hbm [shape: f32[256,128], index: 7, kind: input, shape index: {}]   ;;  %s1166_s8 = inlined_call_operand.vmem [shape: f32[1,128], index: 8, kind: input, shape index: {}]   ;;  %s1167_s9 = inlined_call_operand.vmem [shape: f32[16,8], index: 9, kind: output, shape index: {}]  }
   0x1   :  { %15 = vsyncpa [#allocation5], 0 }
   0x2   :  { %16 = vsyncpa [#allocation8], 0  ;;  %s1001_s30 = smov [#allocation4]   ;;  %s885_s13 = scalar_lea.hbm %s1159_s1, 1024 }
   0x3   :  { %s32_s10 = sshll.u32 %s1001_s30, 4  ;;  %p886_p0 = scmp.ne.s32.totalorder %s1159_s1, %s885_s13  ;;  %s33_s10 = int_to_ptr.vmem [resolvable:$true] %s32_s10 }
   0x4   :  { %p889_p1 = scmp.lt.u32.totalorder %s885_s13, %s1159_s1 }
   0x6   :  { %p891_p2 = pnand %p889_p1, %p886_p0 }
   0x8   :  { %894 = shalt.err (!%p891_p2)
}
   0x9   :  { %s895_s18 = scalar_lea.vmem %s33_s10, 1024  ;;  %p900_p4 = scmp.lt.s32.totalorder %s33_s10, %s33_s10 }
   0xa   :  { %p896_p3 = scmp.ne.s32.totalorder %s33_s10, %s895_s18  ;;  %p901_p5 = scmp.lt.s32.totalorder %s895_s18, %s895_s18 }
   0xc   :  { %p902_p6 = por %p901_p5, %p900_p4 }
   0xe   :  { %p903_p7 = pnand %p902_p6, %p896_p3 }
  0x10   :  { %906 = shalt.err (!%p903_p7)
}
  0x11   :  { %s1002_s19 = smov 256   ;;  %s1003_s20 = smov 16  }
  0x12   :  { %38 = dma.hbm_to_vmem [thread:$0]  %s1159_s1, 1024, %s33_s10, [#allocation5], %s1002_s19, %s1002_s19, %s1003_s20  }
  0x13   :  { %s1004_s23 = smov [#allocation7]   ;;  %s1005_s25 = smov [#allocation2]  }
  0x14   :  { %s60_s24 = sshll.u32 %s1004_s23, 4  ;;  %s23_s26 = sshll.u32 %s1005_s25, 4  ;;  %s61_s24 = int_to_ptr.vmem [resolvable:$true] %s60_s24  ;;  %s24_s26 = int_to_ptr.vmem [resolvable:$true] %s23_s26 }
  0x15   :  { %s907_s29 = scalar_lea.hbm %s1163_s5, 8192 }
  0x16   :  { %p908_p8 = scmp.ne.s32.totalorder %s1163_s5, %s907_s29  ;;  %p911_p9 = scmp.lt.u32.totalorder %s907_s29, %s1163_s5 }
  0x18   :  { %p913_p10 = pnand %p911_p9, %p908_p8 }
  0x1a   :  { %916 = shalt.err (!%p913_p10)
}
  0x1b   :  { %s917_s1 = scalar_lea.vmem %s61_s24, 8192  ;;  %p922_p12 = scmp.lt.s32.totalorder %s61_s24, %s61_s24 }
  0x1c   :  { %p918_p11 = scmp.ne.s32.totalorder %s61_s24, %s917_s1  ;;  %p923_p13 = scmp.lt.s32.totalorder %s917_s1, %s917_s1 }
  0x1e   :  { %p924_p0 = por %p923_p13, %p922_p12 }
  0x20   :  { %p925_p1 = pnand %p924_p0, %p918_p11 }
  0x22   :  { %928 = shalt.err (!%p925_p1)
}
  0x23   :  { %66 = dma.hbm_to_vmem [thread:$0]  %s1163_s5, 8192, %s61_s24, [#allocation8], %s1002_s19, %s1002_s19, %s1003_s20  }
  0x24   :  { %s929_s17 = scalar_lea.hbm %s1158_s0, 128 }
  0x25   :  { %p930_p2 = scmp.ne.s32.totalorder %s1158_s0, %s929_s17  ;;  %p933_p3 = scmp.lt.u32.totalorder %s929_s17, %s1158_s0 }
  0x27   :  { %p935_p4 = pnand %p933_p3, %p930_p2 }
  0x29   :  { %938 = shalt.err (!%p935_p4)
}
  0x2a   :  { %s939_s25 = scalar_lea.vmem %s24_s26, 128  ;;  %p944_p6 = scmp.lt.s32.totalorder %s24_s26, %s24_s26 }
  0x2b   :  { %p940_p5 = scmp.ne.s32.totalorder %s24_s26, %s939_s25  ;;  %p945_p7 = scmp.lt.s32.totalorder %s939_s25, %s939_s25 }
  0x2d   :  { %p946_p8 = por %p945_p7, %p944_p6 }
  0x2f   :  { %p947_p9 = pnand %p946_p8, %p940_p5 }
  0x31   :  { %950 = shalt.err (!%p947_p9)
}
  0x32   :  { %26 = dma.hbm_to_vmem [thread:$0]  %s1158_s0, 128, %s24_s26, [#allocation3]  }
  0x33   :  { %s1006_s27 = smov [#allocation6]   ;;  %s1007_s29 = smov [#allocation9]  }
  0x34   :  { %s46_s28 = sshll.u32 %s1006_s27, 4  ;;  %s74_s30 = sshll.u32 %s1007_s29, 4  ;;  %s47_s28 = int_to_ptr.vmem [resolvable:$true] %s46_s28  ;;  %s75_s30 = int_to_ptr.vmem [resolvable:$true] %s74_s30 }
  0x35   :  { %s951_s13 = scalar_lea.hbm %s1161_s3, 8192 }
  0x36   :  { %p952_p10 = scmp.ne.s32.totalorder %s1161_s3, %s951_s13  ;;  %p955_p11 = scmp.lt.u32.totalorder %s951_s13, %s1161_s3 }
  0x38   :  { %p957_p12 = pnand %p955_p11, %p952_p10 }
  0x3a   :  { %960 = shalt.err (!%p957_p12)
}
  0x3b   :  { %s961_s0 = scalar_lea.vmem %s47_s28, 8192  ;;  %p966_p0 = scmp.lt.s32.totalorder %s47_s28, %s47_s28 }
  0x3c   :  { %p962_p13 = scmp.ne.s32.totalorder %s47_s28, %s961_s0  ;;  %p967_p1 = scmp.lt.s32.totalorder %s961_s0, %s961_s0 }
  0x3e   :  { %p968_p2 = por %p967_p1, %p966_p0 }
  0x40   :  { %p969_p3 = pnand %p968_p2, %p962_p13 }
  0x42   :  { %972 = shalt.err (!%p969_p3)
}
  0x43   :  { %52 = dma.hbm_to_vmem [thread:$0]  %s1161_s3, 8192, %s47_s28, [#allocation5], %s1002_s19, %s1002_s19, %s1003_s20  }
  0x44   :  { %s973_s21 = scalar_lea.hbm %s1165_s7, 4096 }
  0x45   :  { %p974_p4 = scmp.ne.s32.totalorder %s1165_s7, %s973_s21  ;;  %p977_p5 = scmp.lt.u32.totalorder %s973_s21, %s1165_s7 }
  0x47   :  { %p979_p6 = pnand %p977_p5, %p974_p4 }
  0x49   :  { %982 = shalt.err (!%p979_p6)
}
  0x4a   :  { %s983_s24 = scalar_lea.vmem %s75_s30, 4096  ;;  %p988_p8 = scmp.lt.s32.totalorder %s75_s30, %s75_s30 }
  0x4b   :  { %p984_p7 = scmp.ne.s32.totalorder %s75_s30, %s983_s24  ;;  %p989_p9 = scmp.lt.s32.totalorder %s983_s24, %s983_s24 }
  0x4d   :  { %p990_p10 = por %p989_p9, %p988_p8 }
  0x4f   :  { %p991_p11 = pnand %p990_p10, %p984_p7 }
  0x51   :  { %994 = shalt.err (!%p991_p11)
}
  0x52   :  { %s1008_s3 = smov 128   ;;  %s1009_s19 = smov 8  }
  0x53   :  { %80 = dma.hbm_to_vmem [thread:$0]  %s1165_s7, 4096, %s75_s30, [#allocation8], %s1008_s3, %s1008_s3, %s1009_s19  }
  0x54   :  { %995 = dma.done.wait [#allocation3], 128  }
  0x55   :  { %996 = vsyncadd [#allocation3], 4294967168 }
  0x56   :  { %997 = dma.done.wait [#allocation5], 9216  }
  0x57   :  { %998 = vsyncadd [#allocation5], 4294958080 }
  0x58   :  { %999 = dma.done.wait [#allocation8], 12288  }
  0x59   :  { %1000 = vsyncadd [#allocation8], 4294955008  ;;  %v1010_v0 = vmov 0.0   ;;  %v100_v1 = vld [vmem:[#allocation4 + $0x8] sm:$0xff]  ;;  %v102_v2 = vld [vmem:[#allocation4 + $0x18] sm:$0xff]  ;;  %vm119_vm0 = vcmask 261120  }
  0x5a   :  { %187 = vmatprep.mubr.f32.mxu0 %v1010_v0  ;;  %v99_v3 = vld [vmem:[#allocation4] sm:$0xff]  ;;  %v703_v4 = vpack.c.bf16 %v102_v2, %v100_v1  ;;  %v101_v5 = vld [vmem:[#allocation4 + $0x10] sm:$0xff]  ;;  %v104_v6 = vld [vmem:[#allocation4 + $0x28] sm:$0xff]  ;;  %vm654_vm1 = vcmask 64512  }
  0x5b   :  { %v106_v7 = vld [vmem:[#allocation4 + $0x38] sm:$0xff]  ;;  %v705_v8 = vpack.c.bf16 %v101_v5, %v99_v3  ;;  %v103_v10 = vld [vmem:[#allocation4 + $0x20] sm:$0xff]  ;;  %v105_v11 = vld [vmem:[#allocation4 + $0x30] sm:$0xff] }
  0x5c   :  { %v707_v9 = vpack.c.bf16 %v106_v7, %v104_v6  ;;  %704 = vmatprep.subr.bf16.mxu0 %v703_v4  ;;  %v197_v12 = vld [vmem:[#allocation6 + $0x8] sm:$0xff]  ;;  %v199_v13 = vld [vmem:[#allocation6 + $0x18] sm:$0xff]  ;;  %v196_v14 = vld [vmem:[#allocation6] sm:$0xff]  ;;  %v709_v15 = vpack.c.bf16 %v105_v11, %v103_v10 }
  0x5d   :  { %706 = vmatpush1.bf16.msra.mxu0 %v705_v8  ;;  %v711_v16 = vpack.c.bf16 %v199_v13, %v197_v12  ;;  %v198_v17 = vld [vmem:[#allocation6 + $0x10] sm:$0xff]  ;;  %v201_v18 = vld [vmem:[#allocation6 + $0x28] sm:$0xff]  ;;  %v203_v19 = vld [vmem:[#allocation6 + $0x38] sm:$0xff] }
  0x5e   :  { %708 = vmatprep.subr.bf16.mxu0 %v707_v9  ;;  %v713_v20 = vpack.c.bf16 %v198_v17, %v196_v14  ;;  %v715_v21 = vpack.c.bf16 %v203_v19, %v201_v18  ;;  %v200_v22 = vld [vmem:[#allocation6 + $0x20] sm:$0xff]  ;;  %v202_v23 = vld [vmem:[#allocation6 + $0x30] sm:$0xff]  ;;  %v205_v24 = vld [vmem:[#allocation6 + $0x48] sm:$0xff] }
  0x5f   :  { %712 = vmatprep.subr.bf16.mxu1 %v711_v16  ;;  %v207_v25 = vld [vmem:[#allocation6 + $0x58] sm:$0xff]  ;;  %v717_v26 = vpack.c.bf16 %v202_v23, %v200_v22  ;;  %v204_v29 = vld [vmem:[#allocation6 + $0x40] sm:$0xff]  ;;  %v206_v30 = vld [vmem:[#allocation6 + $0x50] sm:$0xff] }
  0x60   :  { %714 = vmatpush1.bf16.msra.mxu1 %v713_v20  ;;  %v98_v27 = vld [vmem:[#allocation2] sm:$0xff]  ;;  %v719_v28 = vpack.c.bf16 %v207_v25, %v205_v24  ;;  %v209_v31 = vld [vmem:[#allocation6 + $0x68] sm:$0xff]  ;;  %v721_v33 = vpack.c.bf16 %v206_v30, %v204_v29  ;;  %v208_v35 = vld [vmem:[#allocation6 + $0x60] sm:$0xff] }
  0x61   :  { %710 = vmatpush1.bf16.msra.mxu0 %v709_v15  ;;  %716 = vmatprep.subr.bf16.mxu1 %v715_v21  ;;  %v211_v32 = vld [vmem:[#allocation6 + $0x78] sm:$0xff]  ;;  %v210_v36 = vld [vmem:[#allocation6 + $0x70] sm:$0xff]  ;;  %v213_v37 = vld [vmem:[#allocation6 + $0x88] sm:$0xff] }
  0x62   :  { %v723_v34 = vpack.c.bf16 %v211_v32, %v209_v31  ;;  %v215_v38 = vld [vmem:[#allocation6 + $0x98] sm:$0xff]  ;;  %v725_v39 = vpack.c.bf16 %v210_v36, %v208_v35  ;;  %v212_v41 = vld [vmem:[#allocation6 + $0x80] sm:$0xff]  ;;  %v214_v42 = vld [vmem:[#allocation6 + $0x90] sm:$0xff] }
  0x63   :  { %v727_v40 = vpack.c.bf16 %v215_v38, %v213_v37  ;;  %v217_v43 = vld [vmem:[#allocation6 + $0xa8] sm:$0xff]  ;;  %v219_v44 = vld [vmem:[#allocation6 + $0xb8] sm:$0xff]  ;;  %v729_v45 = vpack.c.bf16 %v214_v42, %v212_v41  ;;  %v216_v47 = vld [vmem:[#allocation6 + $0xa0] sm:$0xff] }
  0x64   :  { %664 = vmatmul.mubr.msk.f32.vlgmr.msra.gmra.mrb[0].mxu0 %vm119_vm0, %v98_v27  ;;  %718 = vmatpush1.bf16.msra.mxu1 %v717_v26  ;;  %v731_v46 = vpack.c.bf16 %v219_v44, %v217_v43  ;;  %v218_v48 = vld [vmem:[#allocation6 + $0xb0] sm:$0xff]  ;;  %v221_v49 = vld [vmem:[#allocation6 + $0xc8] sm:$0xff]  ;;  %v223_v50 = vld [vmem:[#allocation6 + $0xd8] sm:$0xff] }
  0x65   :  { %720 = vmatprep.subr.bf16.mxu1 %v719_v28  ;;  %v733_v51 = vpack.c.bf16 %v218_v48, %v216_v47  ;;  %v735_v52 = vpack.c.bf16 %v223_v50, %v221_v49  ;;  %v220_v53 = vld [vmem:[#allocation6 + $0xc0] sm:$0xff]  ;;  %v222_v54 = vld [vmem:[#allocation6 + $0xd0] sm:$0xff]  ;;  %v225_v55 = vld [vmem:[#allocation6 + $0xe8] sm:$0xff] }
  0x66   :  { %v227_v56 = vld [vmem:[#allocation6 + $0xf8] sm:$0xff]  ;;  %v737_v57 = vpack.c.bf16 %v222_v54, %v220_v53  ;;  %v224_v59 = vld [vmem:[#allocation6 + $0xe0] sm:$0xff]  ;;  %v226_v60 = vld [vmem:[#allocation6 + $0xf0] sm:$0xff] }
  0x67   :  { %v739_v58 = vpack.c.bf16 %v227_v56, %v225_v55  ;;  %v229_v61 = vld [vmem:[#allocation6 + $0x108] sm:$0xff]  ;;  %v231_v62 = vld [vmem:[#allocation6 + $0x118] sm:$0xff]  ;;  %v741_v63 = vpack.c.bf16 %v226_v60, %v224_v59  ;;  %v228_v1 = vld [vmem:[#allocation6 + $0x100] sm:$0xff] }
  0x68   :  { %722 = vmatpush1.bf16.msra.mxu1 %v721_v33  ;;  %v743_v0 = vpack.c.bf16 %v231_v62, %v229_v61  ;;  %v230_v2 = vld [vmem:[#allocation6 + $0x110] sm:$0xff]  ;;  %v233_v3 = vld [vmem:[#allocation6 + $0x128] sm:$0xff]  ;;  %v235_v4 = vld [vmem:[#allocation6 + $0x138] sm:$0xff] }
  0x69   :  { %724 = vmatprep.subr.bf16.mxu1 %v723_v34  ;;  %v745_v5 = vpack.c.bf16 %v230_v2, %v228_v1  ;;  %v747_v6 = vpack.c.bf16 %v235_v4, %v233_v3  ;;  %v232_v7 = vld [vmem:[#allocation6 + $0x120] sm:$0xff]  ;;  %v234_v8 = vld [vmem:[#allocation6 + $0x130] sm:$0xff]  ;;  %v237_v9 = vld [vmem:[#allocation6 + $0x148] sm:$0xff] }
  0x6a   :  { %v239_v10 = vld [vmem:[#allocation6 + $0x158] sm:$0xff]  ;;  %v749_v11 = vpack.c.bf16 %v234_v8, %v232_v7  ;;  %v236_v13 = vld [vmem:[#allocation6 + $0x140] sm:$0xff]  ;;  %v238_v14 = vld [vmem:[#allocation6 + $0x150] sm:$0xff] }
  0x6b   :  { %v751_v12 = vpack.c.bf16 %v239_v10, %v237_v9  ;;  %v241_v15 = vld [vmem:[#allocation6 + $0x168] sm:$0xff]  ;;  %v243_v16 = vld [vmem:[#allocation6 + $0x178] sm:$0xff]  ;;  %v753_v17 = vpack.c.bf16 %v238_v14, %v236_v13  ;;  %v240_v19 = vld [vmem:[#allocation6 + $0x160] sm:$0xff] }
  0x6c   :  { %726 = vmatpush1.bf16.msra.mxu1 %v725_v39  ;;  %v755_v18 = vpack.c.bf16 %v243_v16, %v241_v15  ;;  %v242_v20 = vld [vmem:[#allocation6 + $0x170] sm:$0xff]  ;;  %v245_v21 = vld [vmem:[#allocation6 + $0x188] sm:$0xff]  ;;  %v247_v22 = vld [vmem:[#allocation6 + $0x198] sm:$0xff] }
  0x6d   :  { %728 = vmatprep.subr.bf16.mxu1 %v727_v40  ;;  %v757_v23 = vpack.c.bf16 %v242_v20, %v240_v19  ;;  %v759_v24 = vpack.c.bf16 %v247_v22, %v245_v21  ;;  %v244_v25 = vld [vmem:[#allocation6 + $0x180] sm:$0xff]  ;;  %v246_v26 = vld [vmem:[#allocation6 + $0x190] sm:$0xff]  ;;  %v249_v27 = vld [vmem:[#allocation6 + $0x1a8] sm:$0xff] }
  0x6e   :  { %v251_v28 = vld [vmem:[#allocation6 + $0x1b8] sm:$0xff]  ;;  %v761_v29 = vpack.c.bf16 %v246_v26, %v244_v25  ;;  %v248_v31 = vld [vmem:[#allocation6 + $0x1a0] sm:$0xff]  ;;  %v250_v32 = vld [vmem:[#allocation6 + $0x1b0] sm:$0xff] }
  0x6f   :  { %v763_v30 = vpack.c.bf16 %v251_v28, %v249_v27  ;;  %v253_v33 = vld [vmem:[#allocation6 + $0x1c8] sm:$0xff]  ;;  %v255_v34 = vld [vmem:[#allocation6 + $0x1d8] sm:$0xff]  ;;  %v765_v35 = vpack.c.bf16 %v250_v32, %v248_v31  ;;  %v252_v37 = vld [vmem:[#allocation6 + $0x1c0] sm:$0xff] }
  0x70   :  { %730 = vmatpush1.bf16.msra.mxu1 %v729_v45  ;;  %v767_v36 = vpack.c.bf16 %v255_v34, %v253_v33  ;;  %v254_v38 = vld [vmem:[#allocation6 + $0x1d0] sm:$0xff]  ;;  %v257_v40 = vld [vmem:[#allocation6 + $0x1e8] sm:$0xff]  ;;  %v259_v41 = vld [vmem:[#allocation6 + $0x1f8] sm:$0xff] }
  0x71   :  { %732 = vmatprep.subr.bf16.mxu1 %v731_v46  ;;  %v769_v39 = vpack.c.bf16 %v254_v38, %v252_v37  ;;  %v771_v42 = vpack.c.bf16 %v259_v41, %v257_v40  ;;  %v256_v43 = vld [vmem:[#allocation6 + $0x1e0] sm:$0xff]  ;;  %v258_v44 = vld [vmem:[#allocation6 + $0x1f0] sm:$0xff]  ;;  %v346_v46 = vld [vmem:[#allocation7 + $0x8] sm:$0xff] }
  0x72   :  { %v773_v45 = vpack.c.bf16 %v258_v44, %v256_v43  ;;  %v348_v47 = vld [vmem:[#allocation7 + $0x18] sm:$0xff]  ;;  %v345_v48 = vld [vmem:[#allocation7] sm:$0xff]  ;;  %v347_v50 = vld [vmem:[#allocation7 + $0x10] sm:$0xff] }
  0x73   :  { %v775_v49 = vpack.c.bf16 %v348_v47, %v346_v46  ;;  %v777_v53 = vpack.c.bf16 %v347_v50, %v345_v48  ;;  %v349_v55 = vld [vmem:[#allocation7 + $0x20] sm:$0xff]  ;;  %v351_v56 = vld [vmem:[#allocation7 + $0x30] sm:$0xff]  ;;  %v386_v41 = vld [vmem:[#allocation7 + $0x148] sm:$0xff] }
  0x74   :  { %734 = vmatpush1.bf16.msra.mxu1 %v733_v51  ;;  %v350_v51 = vld [vmem:[#allocation7 + $0x28] sm:$0xff]  ;;  %v781_v59 = vpack.c.bf16 %v351_v56, %v349_v55  ;;  %v353_v61 = vld [vmem:[#allocation7 + $0x40] sm:$0xff]  ;;  %v355_v62 = vld [vmem:[#allocation7 + $0x50] sm:$0xff] }
  0x75   :  { %736 = vmatprep.subr.bf16.mxu1 %v735_v52  ;;  %v352_v52 = vld [vmem:[#allocation7 + $0x38] sm:$0xff]  ;;  %776 = vmatprep.subr.bf16.mxu0 %v775_v49  ;;  %v785_v1 = vpack.c.bf16 %v355_v62, %v353_v61  ;;  %v357_v3 = vld [vmem:[#allocation7 + $0x60] sm:$0xff]  ;;  %v359_v4 = vld [vmem:[#allocation7 + $0x70] sm:$0xff] }
  0x76   :  { %v779_v54 = vpack.c.bf16 %v352_v52, %v350_v51  ;;  %778 = vmatpush1.bf16.msra.mxu0 %v777_v53  ;;  %v789_v7 = vpack.c.bf16 %v359_v4, %v357_v3  ;;  %v361_v9 = vld [vmem:[#allocation7 + $0x80] sm:$0xff]  ;;  %v363_v10 = vld [vmem:[#allocation7 + $0x90] sm:$0xff]  ;;  %v390_v47 = vld [vmem:[#allocation7 + $0x168] sm:$0xff] }
  0x77   :  { %v793_v13 = vpack.c.bf16 %v363_v10, %v361_v9  ;;  %v365_v15 = vld [vmem:[#allocation7 + $0xa0] sm:$0xff]  ;;  %v367_v16 = vld [vmem:[#allocation7 + $0xb0] sm:$0xff]  ;;  %v392_v48 = vld [vmem:[#allocation7 + $0x178] sm:$0xff] }
  0x78   :  { %738 = vmatpush1.bf16.msra.mxu1 %v737_v57  ;;  %v354_v57 = vld [vmem:[#allocation7 + $0x48] sm:$0xff]  ;;  %780 = vmatprep.subr.bf16.mxu0 %v779_v54  ;;  %v797_v19 = vpack.c.bf16 %v367_v16, %v365_v15  ;;  %v369_v21 = vld [vmem:[#allocation7 + $0xc0] sm:$0xff]  ;;  %v371_v22 = vld [vmem:[#allocation7 + $0xd0] sm:$0xff]  ;;  %v819_v50 = vpack.c.bf16 %v392_v48, %v390_v47 }
  0x79   :  { %740 = vmatprep.subr.bf16.mxu1 %v739_v58  ;;  %v356_v58 = vld [vmem:[#allocation7 + $0x58] sm:$0xff]  ;;  %v801_v25 = vpack.c.bf16 %v371_v22, %v369_v21  ;;  %v373_v27 = vld [vmem:[#allocation7 + $0xe0] sm:$0xff]  ;;  %v375_v28 = vld [vmem:[#allocation7 + $0xf0] sm:$0xff] }
  0x7a   :  { %v783_v60 = vpack.c.bf16 %v356_v58, %v354_v57  ;;  %782 = vmatpush1.bf16.msra.mxu0 %v781_v59  ;;  %v805_v31 = vpack.c.bf16 %v375_v28, %v373_v27  ;;  %v377_v33 = vld [vmem:[#allocation7 + $0x100] sm:$0xff]  ;;  %v379_v34 = vld [vmem:[#allocation7 + $0x110] sm:$0xff]  ;;  %v394_v53 = vld [vmem:[#allocation7 + $0x188] sm:$0xff] }
  0x7b   :  { %v809_v37 = vpack.c.bf16 %v379_v34, %v377_v33  ;;  %v383_v40 = vld [vmem:[#allocation7 + $0x130] sm:$0xff]  ;;  %v389_v51 = vld [vmem:[#allocation7 + $0x160] sm:$0xff]  ;;  %v396_v54 = vld [vmem:[#allocation7 + $0x198] sm:$0xff] }
  0x7c   :  { %742 = vmatpush1.bf16.msra.mxu1 %v741_v63  ;;  %v358_v63 = vld [vmem:[#allocation7 + $0x68] sm:$0xff]  ;;  %784 = vmatprep.subr.bf16.mxu0 %v783_v60  ;;  %v387_v46 = vld [vmem:[#allocation7 + $0x150] sm:$0xff]  ;;  %v823_v56 = vpack.c.bf16 %v396_v54, %v394_v53  ;;  %v393_v57 = vld [vmem:[#allocation7 + $0x180] sm:$0xff] }
  0x7d   :  { %744 = vmatprep.subr.bf16.mxu1 %v743_v0  ;;  %v360_v0 = vld [vmem:[#allocation7 + $0x78] sm:$0xff]  ;;  %v391_v52 = vld [vmem:[#allocation7 + $0x170] sm:$0xff]  ;;  %v398_v59 = vld [vmem:[#allocation7 + $0x1a8] sm:$0xff] }
  0x7e   :  { %v787_v2 = vpack.c.bf16 %v360_v0, %v358_v63  ;;  %786 = vmatpush1.bf16.msra.mxu0 %v785_v1  ;;  %v821_v55 = vpack.c.bf16 %v391_v52, %v389_v51  ;;  %v395_v58 = vld [vmem:[#allocation7 + $0x190] sm:$0xff]  ;;  %v400_v60 = vld [vmem:[#allocation7 + $0x1b8] sm:$0xff]  ;;  %v397_v63 = vld [vmem:[#allocation7 + $0x1a0] sm:$0xff] }
  0x7f   :  { %v825_v61 = vpack.c.bf16 %v395_v58, %v393_v57  ;;  %v827_v62 = vpack.c.bf16 %v400_v60, %v398_v59  ;;  %v399_v0 = vld [vmem:[#allocation7 + $0x1b0] sm:$0xff]  ;;  %v402_v1 = vld [vmem:[#allocation7 + $0x1c8] sm:$0xff]  ;;  %v408_v22 = vld [vmem:[#allocation7 + $0x1f8] sm:$0xff] }
  0x80   :  { %746 = vmatpush1.bf16.msra.mxu1 %v745_v5  ;;  %v362_v5 = vld [vmem:[#allocation7 + $0x88] sm:$0xff]  ;;  %788 = vmatprep.subr.bf16.mxu0 %v787_v2  ;;  %v404_v2 = vld [vmem:[#allocation7 + $0x1d8] sm:$0xff]  ;;  %v829_v3 = vpack.c.bf16 %v399_v0, %v397_v63  ;;  %v510_v27 = vld [vmem:[#allocation9 + $0x80] sm:$0xff] }
  0x81   :  { %748 = vmatprep.subr.bf16.mxu1 %v747_v6  ;;  %v364_v6 = vld [vmem:[#allocation7 + $0x98] sm:$0xff]  ;;  %v831_v4 = vpack.c.bf16 %v404_v2, %v402_v1  ;;  %v406_v21 = vld [vmem:[#allocation7 + $0x1e8] sm:$0xff]  ;;  %v500_v48 = vld [vmem:[#allocation9 + $0x30] sm:$0xff] }
  0x82   :  { %v791_v8 = vpack.c.bf16 %v364_v6, %v362_v5  ;;  %790 = vmatpush1.bf16.msra.mxu0 %v789_v7  ;;  %v109_v5 = vlaneseq  ;;  %v511_v28 = vld [vmem:[#allocation9 + $0x88] sm:$0xff]  ;;  %v513_v33 = vld [vmem:[#allocation9 + $0x98] sm:$0xff]  ;;  %v502_v54 = vld [vmem:[#allocation9 + $0x40] sm:$0xff] }
  0x83   :  { %v519_v51 = vld [vmem:[#allocation9 + $0xc8] sm:$0xff]  ;;  %v521_v57 = vld [vmem:[#allocation9 + $0xd8] sm:$0xff]  ;;  %v504_v60 = vld [vmem:[#allocation9 + $0x50] sm:$0xff] }
  0x84   :  { %750 = vmatpush1.bf16.msra.mxu1 %v749_v11  ;;  %v366_v11 = vld [vmem:[#allocation7 + $0xa8] sm:$0xff]  ;;  %792 = vmatprep.subr.bf16.mxu0 %v791_v8  ;;  %v110_v6 = vshrl.u32 %v109_v5, 7 }
  0x85   :  { %752 = vmatprep.subr.bf16.mxu1 %v751_v12  ;;  %v368_v12 = vld [vmem:[#allocation7 + $0xb8] sm:$0xff]  ;;  %v107_v8 = vld [vmem:[%s1160_s2] sm:$0x3] }
  0x86   :  { %v795_v14 = vpack.c.bf16 %v368_v12, %v366_v11  ;;  %794 = vmatpush1.bf16.msra.mxu0 %v793_v13  ;;  %v1130_v7 = vsub.s32 0, %v110_v6  ;;  %v1135_v9 = vsub.s32 1, %v110_v6  ;;  %v523_v63 = vld [vmem:[#allocation9 + $0xe8] sm:$0xff] }
  0x87   :  { %v260_v2 = vld [vmem:[%s1162_s4] sm:$0x3] }
  0x88   :  { %754 = vmatpush1.bf16.msra.mxu1 %v753_v17  ;;  %v370_v17 = vld [vmem:[#allocation7 + $0xc8] sm:$0xff]  ;;  %796 = vmatprep.subr.bf16.mxu0 %v795_v14  ;;  %v112_v10 = vrot.slane %v107_v8, %v1130_v7  ;;  %v116_v11 = vrot.slane %v107_v8, %v1135_v9 }
  0x89   :  { %756 = vmatprep.subr.bf16.mxu1 %v755_v18  ;;  %v372_v18 = vld [vmem:[#allocation7 + $0xd8] sm:$0xff] }
  0x8a   :  { %v799_v20 = vpack.c.bf16 %v372_v18, %v370_v17  ;;  %798 = vmatpush1.bf16.msra.mxu0 %v797_v19  ;;  %v401_v18 = vld [vmem:[#allocation7 + $0x1c0] sm:$0xff]  ;;  %v403_v19 = vld [vmem:[#allocation7 + $0x1d0] sm:$0xff] }
  0x8c   :  { %758 = vmatpush1.bf16.msra.mxu1 %v757_v23  ;;  %v374_v23 = vld [vmem:[#allocation7 + $0xe8] sm:$0xff]  ;;  %800 = vmatprep.subr.bf16.mxu0 %v799_v20  ;;  %v833_v20 = vpack.c.bf16 %v403_v19, %v401_v18  ;;  %v508_v19 = vld [vmem:[#allocation9 + $0x70] sm:$0xff] }
  0x8d   :  { %760 = vmatprep.subr.bf16.mxu1 %v759_v24  ;;  %v376_v24 = vld [vmem:[#allocation7 + $0xf8] sm:$0xff] }
  0x8e   :  { %v803_v26 = vpack.c.bf16 %v376_v24, %v374_v23  ;;  %802 = vmatpush1.bf16.msra.mxu0 %v801_v25  ;;  %v835_v23 = vpack.c.bf16 %v408_v22, %v406_v21  ;;  %v405_v24 = vld [vmem:[#allocation7 + $0x1e0] sm:$0xff]  ;;  %v407_v25 = vld [vmem:[#allocation7 + $0x1f0] sm:$0xff]  ;;  %v409_v22 = vld [vmem:[%s1164_s6] sm:$0x3] }
  0x90   :  { %762 = vmatpush1.bf16.msra.mxu1 %v761_v29  ;;  %v378_v29 = vld [vmem:[#allocation7 + $0x108] sm:$0xff]  ;;  %804 = vmatprep.subr.bf16.mxu0 %v803_v26  ;;  %v837_v26 = vpack.c.bf16 %v407_v25, %v405_v24  ;;  %v418_v24 = vrot.slane %v409_v22, %v1135_v9 }
  0x91   :  { %764 = vmatprep.subr.bf16.mxu1 %v763_v30  ;;  %v380_v30 = vld [vmem:[#allocation7 + $0x118] sm:$0xff] }
  0x92   :  { %v807_v32 = vpack.c.bf16 %v380_v30, %v378_v29  ;;  %806 = vmatpush1.bf16.msra.mxu0 %v805_v31  ;;  %v494_v29 = vld [vmem:[#allocation9] sm:$0xff]  ;;  %v839_v30 = vpack.c.bf16 %v511_v28, %v510_v27  ;;  %v495_v31 = vld [vmem:[#allocation9 + $0x8] sm:$0xff] }
  0x93   :  { %v841_v34 = vpack.c.bf16 %v495_v31, %v494_v29 }
  0x94   :  { %766 = vmatpush1.bf16.msra.mxu1 %v765_v35  ;;  %v382_v35 = vld [vmem:[#allocation7 + $0x128] sm:$0xff]  ;;  %808 = vmatprep.subr.bf16.mxu0 %v807_v32  ;;  %v512_v32 = vld [vmem:[#allocation9 + $0x90] sm:$0xff] }
  0x95   :  { %768 = vmatprep.subr.bf16.mxu1 %v767_v36  ;;  %v384_v36 = vld [vmem:[#allocation7 + $0x138] sm:$0xff] }
  0x96   :  { %v811_v38 = vpack.c.bf16 %v384_v36, %v382_v35  ;;  %810 = vmatpush1.bf16.msra.mxu0 %v809_v37  ;;  %v843_v35 = vpack.c.bf16 %v513_v33, %v512_v32  ;;  %v496_v36 = vld [vmem:[#allocation9 + $0x10] sm:$0xff]  ;;  %v497_v37 = vld [vmem:[#allocation9 + $0x18] sm:$0xff]  ;;  %v665_v33 = vld [vmem:[%s1166_s8] ss:$0 sm:$0xff] }
  0x98   :  { %770 = vmatpush1.bf16.msra.mxu1 %v769_v39  ;;  %v381_v39 = vld [vmem:[#allocation7 + $0x120] sm:$0xff]  ;;  %812 = vmatprep.subr.bf16.mxu0 %v811_v38 }
  0x99   :  { %772 = vmatprep.subr.bf16.mxu1 %v771_v42  ;;  %v388_v42 = vld [vmem:[#allocation7 + $0x158] sm:$0xff]  ;;  %v813_v43 = vpack.c.bf16 %v383_v40, %v381_v39  ;;  %v514_v38 = vld [vmem:[#allocation9 + $0xa0] sm:$0xff]  ;;  %v515_v39 = vld [vmem:[#allocation9 + $0xa8] sm:$0xff]  ;;  %v845_v40 = vpack.c.bf16 %v497_v37, %v496_v36 }
  0x9a   :  { %v815_v44 = vpack.c.bf16 %v388_v42, %v386_v41  ;;  %v847_v41 = vpack.c.bf16 %v515_v39, %v514_v38  ;;  %v498_v42 = vld [vmem:[#allocation9 + $0x20] sm:$0xff] }
  0x9b   :  { %814 = vmatpush1.bf16.msra.mxu0 %v813_v43  ;;  %v499_v43 = vld [vmem:[#allocation9 + $0x28] sm:$0xff] }
  0x9c   :  { %774 = vmatpush1.bf16.msra.mxu1 %v773_v45  ;;  %v385_v45 = vld [vmem:[#allocation7 + $0x140] sm:$0xff]  ;;  %816 = vmatprep.subr.bf16.mxu0 %v815_v44  ;;  %v516_v44 = vld [vmem:[#allocation9 + $0xb0] sm:$0xff] }
  0x9d   :  { %v817_v49 = vpack.c.bf16 %v387_v46, %v385_v45  ;;  %840 = vmatprep.subr.bf16.mxu1 %v839_v30  ;;  %v517_v45 = vld [vmem:[#allocation9 + $0xb8] sm:$0xff]  ;;  %v849_v46 = vpack.c.bf16 %v499_v43, %v498_v42 }
  0x9e   :  { %v851_v47 = vpack.c.bf16 %v517_v45, %v516_v44 }
  0x9f   :  { %818 = vmatpush1.bf16.msra.mxu0 %v817_v49  ;;  %v501_v49 = vld [vmem:[#allocation9 + $0x38] sm:$0xff] }
  0xa0   :  { %820 = vmatprep.subr.bf16.mxu0 %v819_v50  ;;  %v518_v50 = vld [vmem:[#allocation9 + $0xc0] sm:$0xff]  ;;  %v853_v52 = vpack.c.bf16 %v501_v49, %v500_v48 }
  0xa1   :  { %v855_v53 = vpack.c.bf16 %v519_v51, %v518_v50 }
  0xa3   :  { %822 = vmatpush1.bf16.msra.mxu0 %v821_v55  ;;  %v503_v55 = vld [vmem:[#allocation9 + $0x48] sm:$0xff] }
  0xa4   :  { %824 = vmatprep.subr.bf16.mxu0 %v823_v56  ;;  %v520_v56 = vld [vmem:[#allocation9 + $0xd0] sm:$0xff]  ;;  %v857_v58 = vpack.c.bf16 %v503_v55, %v502_v54 }
  0xa5   :  { %v859_v59 = vpack.c.bf16 %v521_v57, %v520_v56 }
  0xa7   :  { %826 = vmatpush1.bf16.msra.mxu0 %v825_v61  ;;  %v505_v61 = vld [vmem:[#allocation9 + $0x58] sm:$0xff] }
  0xa8   :  { %828 = vmatprep.subr.bf16.mxu0 %v827_v62  ;;  %v522_v62 = vld [vmem:[#allocation9 + $0xe0] sm:$0xff]  ;;  %v861_v0 = vpack.c.bf16 %v505_v61, %v504_v60 }
  0xa9   :  { %v863_v1 = vpack.c.bf16 %v523_v63, %v522_v62 }
  0xab   :  { %830 = vmatpush1.bf16.msra.mxu0 %v829_v3  ;;  %v265_v3 = vrot.slane %v260_v2, %v1130_v7 }
  0xac   :  { %832 = vmatprep.subr.bf16.mxu0 %v831_v4  ;;  %v269_v4 = vrot.slane %v260_v2, %v1135_v9 }
  0xaf   :  { %834 = vmatpush1.bf16.msra.mxu0 %v833_v20  ;;  %v509_v20 = vld [vmem:[#allocation9 + $0x78] sm:$0xff] }
  0xb0   :  { %836 = vmatprep.subr.bf16.mxu0 %v835_v23  ;;  %v869_v21 = vpack.c.bf16 %v509_v20, %v508_v19  ;;  %v414_v23 = vrot.slane %v409_v22, %v1130_v7 }
  0xb3   :  { %838 = vmatpush1.bf16.msra.mxu0 %v837_v26 }
 0x137   :  { %v189_v12 = vpop.f32.mrb[0].mxu0 }
 0x138   :  { %v190_v13 = vadd.f32 %v189_v12, %v112_v10  ;;  %v191_v14 = vpop.f32.mrb[1].mxu0 }
 0x139   :  { %v192_v15 = vadd.f32 %v191_v14, %v116_v11  ;;  %v507_v14 = vld [vmem:[#allocation9 + $0x68] sm:$0xff] }
 0x13a   :  { %v194_v17 = vmax.f32 %v190_v13, 0.0  ;;  %v506_v13 = vld [vmem:[#allocation9 + $0x60] sm:$0xff] }
 0x13b   :  { %v195_v16 = vmax.f32 %v192_v15, 0.0  ;;  %v865_v15 = vpack.c.bf16 %v507_v14, %v506_v13 }
 0x13d   :  { %336 = vmatprep.mubr.f32.mxu1 %v195_v16  ;;  %v524_v16 = vld [vmem:[#allocation9 + $0xf0] sm:$0xff] }
 0x13e   :  { %337 = vmatmul.mubr.f32.vlgmr.msra.gmra.mrb[0].mxu1 %v194_v17  ;;  %v525_v17 = vld [vmem:[#allocation9 + $0xf8] sm:$0xff] }
 0x13f   :  { %842 = vmatpush3.bf16.msra.mxu1 %v841_v34  ;;  %v867_v18 = vpack.c.bf16 %v525_v17, %v524_v16 }
 0x140   :  { %844 = vmatprep.subr.bf16.mxu1 %v843_v35 }
 0x143   :  { %846 = vmatpush3.bf16.msra.mxu1 %v845_v40 }
 0x144   :  { %848 = vmatprep.subr.bf16.mxu1 %v847_v41 }
 0x147   :  { %850 = vmatpush3.bf16.msra.mxu1 %v849_v46 }
 0x148   :  { %852 = vmatprep.subr.bf16.mxu1 %v851_v47 }
 0x14b   :  { %854 = vmatpush3.bf16.msra.mxu1 %v853_v52 }
 0x14c   :  { %856 = vmatprep.subr.bf16.mxu1 %v855_v53 }
 0x14f   :  { %858 = vmatpush3.bf16.msra.mxu1 %v857_v58 }
 0x150   :  { %860 = vmatprep.subr.bf16.mxu1 %v859_v59 }
 0x153   :  { %862 = vmatpush3.bf16.msra.mxu1 %v861_v0 }
 0x154   :  { %864 = vmatprep.subr.bf16.mxu1 %v863_v1 }
 0x157   :  { %866 = vmatpush3.bf16.msra.mxu1 %v865_v15 }
 0x158   :  { %868 = vmatprep.subr.bf16.mxu1 %v867_v18 }
 0x15b   :  { %870 = vmatpush3.bf16.msra.mxu1 %v869_v21 }
 0x211   :  { %v338_v5 = vpop.f32.mrb[0].mxu1 }
 0x212   :  { %v339_v6 = vadd.f32 %v338_v5, %v265_v3  ;;  %v340_v8 = vpop.f32.mrb[1].mxu1 }
 0x213   :  { %v341_v10 = vadd.f32 %v340_v8, %v269_v4 }
 0x214   :  { %v343_v12 = vmax.f32 %v339_v6, 0.0 }
 0x215   :  { %v344_v11 = vmax.f32 %v341_v10, 0.0 }
 0x217   :  { %485 = vmatprep.mubr.f32.mxu0 %v344_v11 }
 0x218   :  { %486 = vmatmul.mubr.f32.vlgmr.msra.gmra.mrb[2].mxu0 %v343_v12 }
 0x2eb   :  { %v487_v25 = vpop.f32.mrb[2].mxu0 }
 0x2ec   :  { %v488_v26 = vadd.f32 %v487_v25, %v414_v23  ;;  %v489_v27 = vpop.f32.mrb[3].mxu0 }
 0x2ed   :  { %v490_v28 = vadd.f32 %v489_v27, %v418_v24 }
 0x2ee   :  { %v492_v30 = vmax.f32 %v488_v26, 0.0 }
 0x2ef   :  { %v493_v29 = vmax.f32 %v490_v28, 0.0 }
 0x2f1   :  { %597 = vmatprep.mubr.f32.mxu1 %v493_v29 }
 0x2f2   :  { %598 = vmatmul.mubr.f32.vlgmr.msra.gmra.mrb[2].mxu1 %v492_v30 }
 0x3c5   :  { %v700_v31 = vpop.f32.mrb[2].mxu1 }
 0x3c6   :  { %v701_v32 = vpop.f32.mrb[3].mxu1 }
 0x3c7   :  { %v702_v34 = vadd.f32 %v701_v32, %v700_v31 }
 0x3c9   :  { %v600_v35 = vadd.f32 %v702_v34, %v665_v33 }
 0x3cb   :  { %603 = vxpose.xlu0.b32.start.end [1/1] (short) (narrow) %v600_v35, 16 }
 0x44b   :  { %v619_v7 = vpop.trf.xlu0 }
 0x44c   :  { %v666_v36 = vmul.f32 -1.442695, %v619_v7 }
 0x44e   :  { %881 = vpow2.f32 %v666_v36 }
 0x44f   :  { %v620_v9 = vpop.trf.xlu0 }
 0x450   :  { %656 = vst.msk [vmem:[%s1167_s9 + $0x8] sm:$0xff] %vm654_vm1, %v620_v9 }
 0x458   :  { %v882_v37 = vpop.eup %881 }
 0x459   :  { %v646_v38 = vadd.f32 1.0, %v882_v37 }
 0x45b   :  { %883 = vrcp.f32 %v646_v38 }
 0x465   :  { %v884_v39 = vpop.eup %883 }
 0x466   :  { %655 = vst.msk [vmem:[%s1167_s9] sm:$0xff] %vm654_vm1, %v884_v39 }
 0x467   :  { %661 = vsyncpa [#allocation3], 1 }
 0x468   :  { %662 = vsyncpa [#allocation5], 1 }
 0x469   :  { %663 = vsyncpa [#allocation8], 1 }

// kernel: tpu_custom_call.1
= control target key start
LH: loop header
LB: loop body
LE: loop exit
PB: predicated region body
PF: predicated region fallthrough
CT: control target
= control target key end

     0   :  { %14 = vsyncpa [#allocation3], 0  ;;  %s1158_s0 = inlined_call_operand.hbm [shape: f32[8,32], index: 0, kind: input, shape index: {}]   ;;  %s1159_s1 = inlined_call_operand.hbm [shape: f32[32,256], index: 1, kind: input, shape index: {}]   ;;  %s1160_s2 = inlined_call_operand.vmem [shape: f32[1,256], index: 2, kind: input, shape index: {}]   ;;  %s1161_s3 = inlined_call_operand.hbm [shape: f32[256,256], index: 3, kind: input, shape index: {}]   ;;  %s1162_s4 = inlined_call_operand.vmem [shape: f32[1,256], index: 4, kind: input, shape index: {}]   ;;  %s1163_s5 = inlined_call_operand.hbm [shape: f32[256,256], index: 5, kind: input, shape index: {}]   ;;  %s1164_s6 = inlined_call_operand.vmem [shape: f32[1,256], index: 6, kind: input, shape index: {}]   ;;  %s1165_s7 = inlined_call_operand.hbm [shape: f32[256,128], index: 7, kind: input, shape index: {}]   ;;  %s1166_s8 = inlined_call_operand.vmem [shape: f32[1,128], index: 8, kind: input, shape index: {}]   ;;  %s1167_s9 = inlined_call_operand.vmem [shape: f32[16,8], index: 9, kind: output, shape index: {}]  }
   0x1   :  { %15 = vsyncpa [#allocation5], 0 }
   0x2   :  { %16 = vsyncpa [#allocation8], 0  ;;  %s1001_s30 = smov [#allocation4]   ;;  %s885_s13 = scalar_lea.hbm %s1159_s1, 1024 }
   0x3   :  { %s32_s10 = sshll.u32 %s1001_s30, 4  ;;  %p886_p0 = scmp.ne.s32.totalorder %s1159_s1, %s885_s13  ;;  %s33_s10 = int_to_ptr.vmem [resolvable:$true] %s32_s10 }
   0x4   :  { %p889_p1 = scmp.lt.u32.totalorder %s885_s13, %s1159_s1 }
   0x6   :  { %p891_p2 = pnand %p889_p1, %p886_p0 }
   0x8   :  { %894 = shalt.err (!%p891_p2)
}
   0x9   :  { %s895_s18 = scalar_lea.vmem %s33_s10, 1024  ;;  %p900_p4 = scmp.lt.s32.totalorder %s33_s10, %s33_s10 }
   0xa   :  { %p896_p3 = scmp.ne.s32.totalorder %s33_s10, %s895_s18  ;;  %p901_p5 = scmp.lt.s32.totalorder %s895_s18, %s895_s18 }
   0xc   :  { %p902_p6 = por %p901_p5, %p900_p4 }
   0xe   :  { %p903_p7 = pnand %p902_p6, %p896_p3 }
  0x10   :  { %906 = shalt.err (!%p903_p7)
}
  0x11   :  { %s1002_s19 = smov 256   ;;  %s1003_s20 = smov 16  }
  0x12   :  { %38 = dma.hbm_to_vmem [thread:$0]  %s1159_s1, 1024, %s33_s10, [#allocation5], %s1002_s19, %s1002_s19, %s1003_s20  }
  0x13   :  { %s1004_s23 = smov [#allocation7]   ;;  %s1005_s25 = smov [#allocation2]  }
  0x14   :  { %s60_s24 = sshll.u32 %s1004_s23, 4  ;;  %s23_s26 = sshll.u32 %s1005_s25, 4  ;;  %s61_s24 = int_to_ptr.vmem [resolvable:$true] %s60_s24  ;;  %s24_s26 = int_to_ptr.vmem [resolvable:$true] %s23_s26 }
  0x15   :  { %s907_s29 = scalar_lea.hbm %s1163_s5, 8192 }
  0x16   :  { %p908_p8 = scmp.ne.s32.totalorder %s1163_s5, %s907_s29  ;;  %p911_p9 = scmp.lt.u32.totalorder %s907_s29, %s1163_s5 }
  0x18   :  { %p913_p10 = pnand %p911_p9, %p908_p8 }
  0x1a   :  { %916 = shalt.err (!%p913_p10)
}
  0x1b   :  { %s917_s1 = scalar_lea.vmem %s61_s24, 8192  ;;  %p922_p12 = scmp.lt.s32.totalorder %s61_s24, %s61_s24 }
  0x1c   :  { %p918_p11 = scmp.ne.s32.totalorder %s61_s24, %s917_s1  ;;  %p923_p13 = scmp.lt.s32.totalorder %s917_s1, %s917_s1 }
  0x1e   :  { %p924_p0 = por %p923_p13, %p922_p12 }
  0x20   :  { %p925_p1 = pnand %p924_p0, %p918_p11 }
  0x22   :  { %928 = shalt.err (!%p925_p1)
}
  0x23   :  { %66 = dma.hbm_to_vmem [thread:$0]  %s1163_s5, 8192, %s61_s24, [#allocation8], %s1002_s19, %s1002_s19, %s1003_s20  }
  0x24   :  { %s929_s17 = scalar_lea.hbm %s1158_s0, 128 }
  0x25   :  { %p930_p2 = scmp.ne.s32.totalorder %s1158_s0, %s929_s17  ;;  %p933_p3 = scmp.lt.u32.totalorder %s929_s17, %s1158_s0 }
  0x27   :  { %p935_p4 = pnand %p933_p3, %p930_p2 }
  0x29   :  { %938 = shalt.err (!%p935_p4)
}
  0x2a   :  { %s939_s25 = scalar_lea.vmem %s24_s26, 128  ;;  %p944_p6 = scmp.lt.s32.totalorder %s24_s26, %s24_s26 }
  0x2b   :  { %p940_p5 = scmp.ne.s32.totalorder %s24_s26, %s939_s25  ;;  %p945_p7 = scmp.lt.s32.totalorder %s939_s25, %s939_s25 }
  0x2d   :  { %p946_p8 = por %p945_p7, %p944_p6 }
  0x2f   :  { %p947_p9 = pnand %p946_p8, %p940_p5 }
  0x31   :  { %950 = shalt.err (!%p947_p9)
}
  0x32   :  { %26 = dma.hbm_to_vmem [thread:$0]  %s1158_s0, 128, %s24_s26, [#allocation3]  }
  0x33   :  { %s1006_s27 = smov [#allocation6]   ;;  %s1007_s29 = smov [#allocation9]  }
  0x34   :  { %s46_s28 = sshll.u32 %s1006_s27, 4  ;;  %s74_s30 = sshll.u32 %s1007_s29, 4  ;;  %s47_s28 = int_to_ptr.vmem [resolvable:$true] %s46_s28  ;;  %s75_s30 = int_to_ptr.vmem [resolvable:$true] %s74_s30 }
  0x35   :  { %s951_s13 = scalar_lea.hbm %s1161_s3, 8192 }
  0x36   :  { %p952_p10 = scmp.ne.s32.totalorder %s1161_s3, %s951_s13  ;;  %p955_p11 = scmp.lt.u32.totalorder %s951_s13, %s1161_s3 }
  0x38   :  { %p957_p12 = pnand %p955_p11, %p952_p10 }
  0x3a   :  { %960 = shalt.err (!%p957_p12)
}
  0x3b   :  { %s961_s0 = scalar_lea.vmem %s47_s28, 8192  ;;  %p966_p0 = scmp.lt.s32.totalorder %s47_s28, %s47_s28 }
  0x3c   :  { %p962_p13 = scmp.ne.s32.totalorder %s47_s28, %s961_s0  ;;  %p967_p1 = scmp.lt.s32.totalorder %s961_s0, %s961_s0 }
  0x3e   :  { %p968_p2 = por %p967_p1, %p966_p0 }
  0x40   :  { %p969_p3 = pnand %p968_p2, %p962_p13 }
  0x42   :  { %972 = shalt.err (!%p969_p3)
}
  0x43   :  { %52 = dma.hbm_to_vmem [thread:$0]  %s1161_s3, 8192, %s47_s28, [#allocation5], %s1002_s19, %s1002_s19, %s1003_s20  }
  0x44   :  { %s973_s21 = scalar_lea.hbm %s1165_s7, 4096 }
  0x45   :  { %p974_p4 = scmp.ne.s32.totalorder %s1165_s7, %s973_s21  ;;  %p977_p5 = scmp.lt.u32.totalorder %s973_s21, %s1165_s7 }
  0x47   :  { %p979_p6 = pnand %p977_p5, %p974_p4 }
  0x49   :  { %982 = shalt.err (!%p979_p6)
}
  0x4a   :  { %s983_s24 = scalar_lea.vmem %s75_s30, 4096  ;;  %p988_p8 = scmp.lt.s32.totalorder %s75_s30, %s75_s30 }
  0x4b   :  { %p984_p7 = scmp.ne.s32.totalorder %s75_s30, %s983_s24  ;;  %p989_p9 = scmp.lt.s32.totalorder %s983_s24, %s983_s24 }
  0x4d   :  { %p990_p10 = por %p989_p9, %p988_p8 }
  0x4f   :  { %p991_p11 = pnand %p990_p10, %p984_p7 }
  0x51   :  { %994 = shalt.err (!%p991_p11)
}
  0x52   :  { %s1008_s3 = smov 128   ;;  %s1009_s19 = smov 8  }
  0x53   :  { %80 = dma.hbm_to_vmem [thread:$0]  %s1165_s7, 4096, %s75_s30, [#allocation8], %s1008_s3, %s1008_s3, %s1009_s19  }
  0x54   :  { %995 = dma.done.wait [#allocation3], 128  }
  0x55   :  { %996 = vsyncadd [#allocation3], 4294967168 }
  0x56   :  { %997 = dma.done.wait [#allocation5], 9216  }
  0x57   :  { %998 = vsyncadd [#allocation5], 4294958080 }
  0x58   :  { %999 = dma.done.wait [#allocation8], 12288  }
  0x59   :  { %1000 = vsyncadd [#allocation8], 4294955008  ;;  %v1010_v0 = vmov 0.0   ;;  %v100_v1 = vld [vmem:[#allocation4 + $0x8] sm:$0xff]  ;;  %v102_v2 = vld [vmem:[#allocation4 + $0x18] sm:$0xff]  ;;  %vm119_vm0 = vcmask 261120  }
  0x5a   :  { %187 = vmatprep.mubr.f32.mxu0 %v1010_v0  ;;  %v99_v3 = vld [vmem:[#allocation4] sm:$0xff]  ;;  %v703_v4 = vpack.c.bf16 %v102_v2, %v100_v1  ;;  %v101_v5 = vld [vmem:[#allocation4 + $0x10] sm:$0xff]  ;;  %v104_v6 = vld [vmem:[#allocation4 + $0x28] sm:$0xff]  ;;  %vm654_vm1 = vcmask 64512  }
  0x5b   :  { %v106_v7 = vld [vmem:[#allocation4 + $0x38] sm:$0xff]  ;;  %v705_v8 = vpack.c.bf16 %v101_v5, %v99_v3  ;;  %v103_v10 = vld [vmem:[#allocation4 + $0x20] sm:$0xff]  ;;  %v105_v11 = vld [vmem:[#allocation4 + $0x30] sm:$0xff] }
  0x5c   :  { %v707_v9 = vpack.c.bf16 %v106_v7, %v104_v6  ;;  %704 = vmatprep.subr.bf16.mxu0 %v703_v4  ;;  %v197_v12 = vld [vmem:[#allocation6 + $0x8] sm:$0xff]  ;;  %v199_v13 = vld [vmem:[#allocation6 + $0x18] sm:$0xff]  ;;  %v196_v14 = vld [vmem:[#allocation6] sm:$0xff]  ;;  %v709_v15 = vpack.c.bf16 %v105_v11, %v103_v10 }
  0x5d   :  { %706 = vmatpush1.bf16.msra.mxu0 %v705_v8  ;;  %v711_v16 = vpack.c.bf16 %v199_v13, %v197_v12  ;;  %v198_v17 = vld [vmem:[#allocation6 + $0x10] sm:$0xff]  ;;  %v201_v18 = vld [vmem:[#allocation6 + $0x28] sm:$0xff]  ;;  %v203_v19 = vld [vmem:[#allocation6 + $0x38] sm:$0xff] }
  0x5e   :  { %708 = vmatprep.subr.bf16.mxu0 %v707_v9  ;;  %v713_v20 = vpack.c.bf16 %v198_v17, %v196_v14  ;;  %v715_v21 = vpack.c.bf16 %v203_v19, %v201_v18  ;;  %v200_v22 = vld [vmem:[#allocation6 + $0x20] sm:$0xff]  ;;  %v202_v23 = vld [vmem:[#allocation6 + $0x30] sm:$0xff]  ;;  %v205_v24 = vld [vmem:[#allocation6 + $0x48] sm:$0xff] }
  0x5f   :  { %712 = vmatprep.subr.bf16.mxu1 %v711_v16  ;;  %v207_v25 = vld [vmem:[#allocation6 + $0x58] sm:$0xff]  ;;  %v717_v26 = vpack.c.bf16 %v202_v23, %v200_v22  ;;  %v204_v29 = vld [vmem:[#allocation6 + $0x40] sm:$0xff]  ;;  %v206_v30 = vld [vmem:[#allocation6 + $0x50] sm:$0xff] }
  0x60   :  { %714 = vmatpush1.bf16.msra.mxu1 %v713_v20  ;;  %v98_v27 = vld [vmem:[#allocation2] sm:$0xff]  ;;  %v719_v28 = vpack.c.bf16 %v207_v25, %v205_v24  ;;  %v209_v31 = vld [vmem:[#allocation6 + $0x68] sm:$0xff]  ;;  %v721_v33 = vpack.c.bf16 %v206_v30, %v204_v29  ;;  %v208_v35 = vld [vmem:[#allocation6 + $0x60] sm:$0xff] }
  0x61   :  { %710 = vmatpush1.bf16.msra.mxu0 %v709_v15  ;;  %716 = vmatprep.subr.bf16.mxu1 %v715_v21  ;;  %v211_v32 = vld [vmem:[#allocation6 + $0x78] sm:$0xff]  ;;  %v210_v36 = vld [vmem:[#allocation6 + $0x70] sm:$0xff]  ;;  %v213_v37 = vld [vmem:[#allocation6 + $0x88] sm:$0xff] }
  0x62   :  { %v723_v34 = vpack.c.bf16 %v211_v32, %v209_v31  ;;  %v215_v38 = vld [vmem:[#allocation6 + $0x98] sm:$0xff]  ;;  %v725_v39 = vpack.c.bf16 %v210_v36, %v208_v35  ;;  %v212_v41 = vld [vmem:[#allocation6 + $0x80] sm:$0xff]  ;;  %v214_v42 = vld [vmem:[#allocation6 + $0x90] sm:$0xff] }
  0x63   :  { %v727_v40 = vpack.c.bf16 %v215_v38, %v213_v37  ;;  %v217_v43 = vld [vmem:[#allocation6 + $0xa8] sm:$0xff]  ;;  %v219_v44 = vld [vmem:[#allocation6 + $0xb8] sm:$0xff]  ;;  %v729_v45 = vpack.c.bf16 %v214_v42, %v212_v41  ;;  %v216_v47 = vld [vmem:[#allocation6 + $0xa0] sm:$0xff] }
  0x64   :  { %664 = vmatmul.mubr.msk.f32.vlgmr.msra.gmra.mrb[0].mxu0 %vm119_vm0, %v98_v27  ;;  %718 = vmatpush1.bf16.msra.mxu1 %v717_v26  ;;  %v731_v46 = vpack.c.bf16 %v219_v44, %v217_v43  ;;  %v218_v48 = vld [vmem:[#allocation6 + $0xb0] sm:$0xff]  ;;  %v221_v49 = vld [vmem:[#allocation6 + $0xc8] sm:$0xff]  ;;  %v223_v50 = vld [vmem:[#allocation6 + $0xd8] sm:$0xff] }
  0x65   :  { %720 = vmatprep.subr.bf16.mxu1 %v719_v28  ;;  %v733_v51 = vpack.c.bf16 %v218_v48, %v216_v47  ;;  %v735_v52 = vpack.c.bf16 %v223_v50, %v221_v49  ;;  %v220_v53 = vld [vmem:[#allocation6 + $0xc0] sm:$0xff]  ;;  %v222_v54 = vld [vmem:[#allocation6 + $0xd0] sm:$0xff]  ;;  %v225_v55 = vld [vmem:[#allocation6 + $0xe8] sm:$0xff] }
  0x66   :  { %v227_v56 = vld [vmem:[#allocation6 + $0xf8] sm:$0xff]  ;;  %v737_v57 = vpack.c.bf16 %v222_v54, %v220_v53  ;;  %v224_v59 = vld [vmem:[#allocation6 + $0xe0] sm:$0xff]  ;;  %v226_v60 = vld [vmem:[#allocation6 + $0xf0] sm:$0xff] }
  0x67   :  { %v739_v58 = vpack.c.bf16 %v227_v56, %v225_v55  ;;  %v229_v61 = vld [vmem:[#allocation6 + $0x108] sm:$0xff]  ;;  %v231_v62 = vld [vmem:[#allocation6 + $0x118] sm:$0xff]  ;;  %v741_v63 = vpack.c.bf16 %v226_v60, %v224_v59  ;;  %v228_v1 = vld [vmem:[#allocation6 + $0x100] sm:$0xff] }
  0x68   :  { %722 = vmatpush1.bf16.msra.mxu1 %v721_v33  ;;  %v743_v0 = vpack.c.bf16 %v231_v62, %v229_v61  ;;  %v230_v2 = vld [vmem:[#allocation6 + $0x110] sm:$0xff]  ;;  %v233_v3 = vld [vmem:[#allocation6 + $0x128] sm:$0xff]  ;;  %v235_v4 = vld [vmem:[#allocation6 + $0x138] sm:$0xff] }
  0x69   :  { %724 = vmatprep.subr.bf16.mxu1 %v723_v34  ;;  %v745_v5 = vpack.c.bf16 %v230_v2, %v228_v1  ;;  %v747_v6 = vpack.c.bf16 %v235_v4, %v233_v3  ;;  %v232_v7 = vld [vmem:[#allocation6 + $0x120] sm:$0xff]  ;;  %v234_v8 = vld [vmem:[#allocation6 + $0x130] sm:$0xff]  ;;  %v237_v9 = vld [vmem:[#allocation6 + $0x148] sm:$0xff] }
  0x6a   :  { %v239_v10 = vld [vmem:[#allocation6 + $0x158] sm:$0xff]  ;;  %v749_v11 = vpack.c.bf16 %v234_v8, %v232_v7  ;;  %v236_v13 = vld [vmem:[#allocation6 + $0x140] sm:$0xff]  ;;  %v238_v14 = vld [vmem:[#allocation6 + $0x150] sm:$0xff] }
  0x6b   :  { %v751_v12 = vpack.c.bf16 %v239_v10, %v237_v9  ;;  %v241_v15 = vld [vmem:[#allocation6 + $0x168] sm:$0xff]  ;;  %v243_v16 = vld [vmem:[#allocation6 + $0x178] sm:$0xff]  ;;  %v753_v17 = vpack.c.bf16 %v238_v14, %v236_v13  ;;  %v240_v19 = vld [vmem:[#allocation6 + $0x160] sm:$0xff] }
  0x6c   :  { %726 = vmatpush1.bf16.msra.mxu1 %v725_v39  ;;  %v755_v18 = vpack.c.bf16 %v243_v16, %v241_v15  ;;  %v242_v20 = vld [vmem:[#allocation6 + $0x170] sm:$0xff]  ;;  %v245_v21 = vld [vmem:[#allocation6 + $0x188] sm:$0xff]  ;;  %v247_v22 = vld [vmem:[#allocation6 + $0x198] sm:$0xff] }
  0x6d   :  { %728 = vmatprep.subr.bf16.mxu1 %v727_v40  ;;  %v757_v23 = vpack.c.bf16 %v242_v20, %v240_v19  ;;  %v759_v24 = vpack.c.bf16 %v247_v22, %v245_v21  ;;  %v244_v25 = vld [vmem:[#allocation6 + $0x180] sm:$0xff]  ;;  %v246_v26 = vld [vmem:[#allocation6 + $0x190] sm:$0xff]  ;;  %v249_v27 = vld [vmem:[#allocation6 + $0x1a8] sm:$0xff] }
  0x6e   :  { %v251_v28 = vld [vmem:[#allocation6 + $0x1b8] sm:$0xff]  ;;  %v761_v29 = vpack.c.bf16 %v246_v26, %v244_v25  ;;  %v248_v31 = vld [vmem:[#allocation6 + $0x1a0] sm:$0xff]  ;;  %v250_v32 = vld [vmem:[#allocation6 + $0x1b0] sm:$0xff] }
  0x6f   :  { %v763_v30 = vpack.c.bf16 %v251_v28, %v249_v27  ;;  %v253_v33 = vld [vmem:[#allocation6 + $0x1c8] sm:$0xff]  ;;  %v255_v34 = vld [vmem:[#allocation6 + $0x1d8] sm:$0xff]  ;;  %v765_v35 = vpack.c.bf16 %v250_v32, %v248_v31  ;;  %v252_v37 = vld [vmem:[#allocation6 + $0x1c0] sm:$0xff] }
  0x70   :  { %730 = vmatpush1.bf16.msra.mxu1 %v729_v45  ;;  %v767_v36 = vpack.c.bf16 %v255_v34, %v253_v33  ;;  %v254_v38 = vld [vmem:[#allocation6 + $0x1d0] sm:$0xff]  ;;  %v257_v40 = vld [vmem:[#allocation6 + $0x1e8] sm:$0xff]  ;;  %v259_v41 = vld [vmem:[#allocation6 + $0x1f8] sm:$0xff] }
  0x71   :  { %732 = vmatprep.subr.bf16.mxu1 %v731_v46  ;;  %v769_v39 = vpack.c.bf16 %v254_v38, %v252_v37  ;;  %v771_v42 = vpack.c.bf16 %v259_v41, %v257_v40  ;;  %v256_v43 = vld [vmem:[#allocation6 + $0x1e0] sm:$0xff]  ;;  %v258_v44 = vld [vmem:[#allocation6 + $0x1f0] sm:$0xff]  ;;  %v346_v46 = vld [vmem:[#allocation7 + $0x8] sm:$0xff] }
  0x72   :  { %v773_v45 = vpack.c.bf16 %v258_v44, %v256_v43  ;;  %v348_v47 = vld [vmem:[#allocation7 + $0x18] sm:$0xff]  ;;  %v345_v48 = vld [vmem:[#allocation7] sm:$0xff]  ;;  %v347_v50 = vld [vmem:[#allocation7 + $0x10] sm:$0xff] }
  0x73   :  { %v775_v49 = vpack.c.bf16 %v348_v47, %v346_v46  ;;  %v777_v53 = vpack.c.bf16 %v347_v50, %v345_v48  ;;  %v349_v55 = vld [vmem:[#allocation7 + $0x20] sm:$0xff]  ;;  %v351_v56 = vld [vmem:[#allocation7 + $0x30] sm:$0xff]  ;;  %v386_v41 = vld [vmem:[#allocation7 + $0x148] sm:$0xff] }
  0x74   :  { %734 = vmatpush1.bf16.msra.mxu1 %v733_v51  ;;  %v350_v51 = vld [vmem:[#allocation7 + $0x28] sm:$0xff]  ;;  %v781_v59 = vpack.c.bf16 %v351_v56, %v349_v55  ;;  %v353_v61 = vld [vmem:[#allocation7 + $0x40] sm:$0xff]  ;;  %v355_v62 = vld [vmem:[#allocation7 + $0x50] sm:$0xff] }
  0x75   :  { %736 = vmatprep.subr.bf16.mxu1 %v735_v52  ;;  %v352_v52 = vld [vmem:[#allocation7 + $0x38] sm:$0xff]  ;;  %776 = vmatprep.subr.bf16.mxu0 %v775_v49  ;;  %v785_v1 = vpack.c.bf16 %v355_v62, %v353_v61  ;;  %v357_v3 = vld [vmem:[#allocation7 + $0x60] sm:$0xff]  ;;  %v359_v4 = vld [vmem:[#allocation7 + $0x70] sm:$0xff] }
  0x76   :  { %v779_v54 = vpack.c.bf16 %v352_v52, %v350_v51  ;;  %778 = vmatpush1.bf16.msra.mxu0 %v777_v53  ;;  %v789_v7 = vpack.c.bf16 %v359_v4, %v357_v3  ;;  %v361_v9 = vld [vmem:[#allocation7 + $0x80] sm:$0xff]  ;;  %v363_v10 = vld [vmem:[#allocation7 + $0x90] sm:$0xff]  ;;  %v390_v47 = vld [vmem:[#allocation7 + $0x168] sm:$0xff] }
  0x77   :  { %v793_v13 = vpack.c.bf16 %v363_v10, %v361_v9  ;;  %v365_v15 = vld [vmem:[#allocation7 + $0xa0] sm:$0xff]  ;;  %v367_v16 = vld [vmem:[#allocation7 + $0xb0] sm:$0xff]  ;;  %v392_v48 = vld [vmem:[#allocation7 + $0x178] sm:$0xff] }
  0x78   :  { %738 = vmatpush1.bf16.msra.mxu1 %v737_v57  ;;  %v354_v57 = vld [vmem:[#allocation7 + $0x48] sm:$0xff]  ;;  %780 = vmatprep.subr.bf16.mxu0 %v779_v54  ;;  %v797_v19 = vpack.c.bf16 %v367_v16, %v365_v15  ;;  %v369_v21 = vld [vmem:[#allocation7 + $0xc0] sm:$0xff]  ;;  %v371_v22 = vld [vmem:[#allocation7 + $0xd0] sm:$0xff]  ;;  %v819_v50 = vpack.c.bf16 %v392_v48, %v390_v47 }
  0x79   :  { %740 = vmatprep.subr.bf16.mxu1 %v739_v58  ;;  %v356_v58 = vld [vmem:[#allocation7 + $0x58] sm:$0xff]  ;;  %v801_v25 = vpack.c.bf16 %v371_v22, %v369_v21  ;;  %v373_v27 = vld [vmem:[#allocation7 + $0xe0] sm:$0xff]  ;;  %v375_v28 = vld [vmem:[#allocation7 + $0xf0] sm:$0xff] }
  0x7a   :  { %v783_v60 = vpack.c.bf16 %v356_v58, %v354_v57  ;;  %782 = vmatpush1.bf16.msra.mxu0 %v781_v59  ;;  %v805_v31 = vpack.c.bf16 %v375_v28, %v373_v27  ;;  %v377_v33 = vld [vmem:[#allocation7 + $0x100] sm:$0xff]  ;;  %v379_v34 = vld [vmem:[#allocation7 + $0x110] sm:$0xff]  ;;  %v394_v53 = vld [vmem:[#allocation7 + $0x188] sm:$0xff] }
  0x7b   :  { %v809_v37 = vpack.c.bf16 %v379_v34, %v377_v33  ;;  %v383_v40 = vld [vmem:[#allocation7 + $0x130] sm:$0xff]  ;;  %v389_v51 = vld [vmem:[#allocation7 + $0x160] sm:$0xff]  ;;  %v396_v54 = vld [vmem:[#allocation7 + $0x198] sm:$0xff] }
  0x7c   :  { %742 = vmatpush1.bf16.msra.mxu1 %v741_v63  ;;  %v358_v63 = vld [vmem:[#allocation7 + $0x68] sm:$0xff]  ;;  %784 = vmatprep.subr.bf16.mxu0 %v783_v60  ;;  %v387_v46 = vld [vmem:[#allocation7 + $0x150] sm:$0xff]  ;;  %v823_v56 = vpack.c.bf16 %v396_v54, %v394_v53  ;;  %v393_v57 = vld [vmem:[#allocation7 + $0x180] sm:$0xff] }
  0x7d   :  { %744 = vmatprep.subr.bf16.mxu1 %v743_v0  ;;  %v360_v0 = vld [vmem:[#allocation7 + $0x78] sm:$0xff]  ;;  %v391_v52 = vld [vmem:[#allocation7 + $0x170] sm:$0xff]  ;;  %v398_v59 = vld [vmem:[#allocation7 + $0x1a8] sm:$0xff] }
  0x7e   :  { %v787_v2 = vpack.c.bf16 %v360_v0, %v358_v63  ;;  %786 = vmatpush1.bf16.msra.mxu0 %v785_v1  ;;  %v821_v55 = vpack.c.bf16 %v391_v52, %v389_v51  ;;  %v395_v58 = vld [vmem:[#allocation7 + $0x190] sm:$0xff]  ;;  %v400_v60 = vld [vmem:[#allocation7 + $0x1b8] sm:$0xff]  ;;  %v397_v63 = vld [vmem:[#allocation7 + $0x1a0] sm:$0xff] }
  0x7f   :  { %v825_v61 = vpack.c.bf16 %v395_v58, %v393_v57  ;;  %v827_v62 = vpack.c.bf16 %v400_v60, %v398_v59  ;;  %v399_v0 = vld [vmem:[#allocation7 + $0x1b0] sm:$0xff]  ;;  %v402_v1 = vld [vmem:[#allocation7 + $0x1c8] sm:$0xff]  ;;  %v408_v22 = vld [vmem:[#allocation7 + $0x1f8] sm:$0xff] }
  0x80   :  { %746 = vmatpush1.bf16.msra.mxu1 %v745_v5  ;;  %v362_v5 = vld [vmem:[#allocation7 + $0x88] sm:$0xff]  ;;  %788 = vmatprep.subr.bf16.mxu0 %v787_v2  ;;  %v404_v2 = vld [vmem:[#allocation7 + $0x1d8] sm:$0xff]  ;;  %v829_v3 = vpack.c.bf16 %v399_v0, %v397_v63  ;;  %v510_v27 = vld [vmem:[#allocation9 + $0x80] sm:$0xff] }
  0x81   :  { %748 = vmatprep.subr.bf16.mxu1 %v747_v6  ;;  %v364_v6 = vld [vmem:[#allocation7 + $0x98] sm:$0xff]  ;;  %v831_v4 = vpack.c.bf16 %v404_v2, %v402_v1  ;;  %v406_v21 = vld [vmem:[#allocation7 + $0x1e8] sm:$0xff]  ;;  %v500_v48 = vld [vmem:[#allocation9 + $0x30] sm:$0xff] }
  0x82   :  { %v791_v8 = vpack.c.bf16 %v364_v6, %v362_v5  ;;  %790 = vmatpush1.bf16.msra.mxu0 %v789_v7  ;;  %v109_v5 = vlaneseq  ;;  %v511_v28 = vld [vmem:[#allocation9 + $0x88] sm:$0xff]  ;;  %v513_v33 = vld [vmem:[#allocation9 + $0x98] sm:$0xff]  ;;  %v502_v54 = vld [vmem:[#allocation9 + $0x40] sm:$0xff] }
  0x83   :  { %v519_v51 = vld [vmem:[#allocation9 + $0xc8] sm:$0xff]  ;;  %v521_v57 = vld [vmem:[#allocation9 + $0xd8] sm:$0xff]  ;;  %v504_v60 = vld [vmem:[#allocation9 + $0x50] sm:$0xff] }
  0x84   :  { %750 = vmatpush1.bf16.msra.mxu1 %v749_v11  ;;  %v366_v11 = vld [vmem:[#allocation7 + $0xa8] sm:$0xff]  ;;  %792 = vmatprep.subr.bf16.mxu0 %v791_v8  ;;  %v110_v6 = vshrl.u32 %v109_v5, 7 }
  0x85   :  { %752 = vmatprep.subr.bf16.mxu1 %v751_v12  ;;  %v368_v12 = vld [vmem:[#allocation7 + $0xb8] sm:$0xff]  ;;  %v107_v8 = vld [vmem:[%s1160_s2] sm:$0x3] }
  0x86   :  { %v795_v14 = vpack.c.bf16 %v368_v12, %v366_v11  ;;  %794 = vmatpush1.bf16.msra.mxu0 %v793_v13  ;;  %v1130_v7 = vsub.s32 0, %v110_v6  ;;  %v1135_v9 = vsub.s32 1, %v110_v6  ;;  %v523_v63 = vld [vmem:[#allocation9 + $0xe8] sm:$0xff] }
  0x87   :  { %v260_v2 = vld [vmem:[%s1162_s4] sm:$0x3] }
  0x88   :  { %754 = vmatpush1.bf16.msra.mxu1 %v753_v17  ;;  %v370_v17 = vld [vmem:[#allocation7 + $0xc8] sm:$0xff]  ;;  %796 = vmatprep.subr.bf16.mxu0 %v795_v14  ;;  %v112_v10 = vrot.slane %v107_v8, %v1130_v7  ;;  %v116_v11 = vrot.slane %v107_v8, %v1135_v9 }
  0x89   :  { %756 = vmatprep.subr.bf16.mxu1 %v755_v18  ;;  %v372_v18 = vld [vmem:[#allocation7 + $0xd8] sm:$0xff] }
  0x8a   :  { %v799_v20 = vpack.c.bf16 %v372_v18, %v370_v17  ;;  %798 = vmatpush1.bf16.msra.mxu0 %v797_v19  ;;  %v401_v18 = vld [vmem:[#allocation7 + $0x1c0] sm:$0xff]  ;;  %v403_v19 = vld [vmem:[#allocation7 + $0x1d0] sm:$0xff] }
  0x8c   :  { %758 = vmatpush1.bf16.msra.mxu1 %v757_v23  ;;  %v374_v23 = vld [vmem:[#allocation7 + $0xe8] sm:$0xff]  ;;  %800 = vmatprep.subr.bf16.mxu0 %v799_v20  ;;  %v833_v20 = vpack.c.bf16 %v403_v19, %v401_v18  ;;  %v508_v19 = vld [vmem:[#allocation9 + $0x70] sm:$0xff] }
  0x8d   :  { %760 = vmatprep.subr.bf16.mxu1 %v759_v24  ;;  %v376_v24 = vld [vmem:[#allocation7 + $0xf8] sm:$0xff] }
  0x8e   :  { %v803_v26 = vpack.c.bf16 %v376_v24, %v374_v23  ;;  %802 = vmatpush1.bf16.msra.mxu0 %v801_v25  ;;  %v835_v23 = vpack.c.bf16 %v408_v22, %v406_v21  ;;  %v405_v24 = vld [vmem:[#allocation7 + $0x1e0] sm:$0xff]  ;;  %v407_v25 = vld [vmem:[#allocation7 + $0x1f0] sm:$0xff]  ;;  %v409_v22 = vld [vmem:[%s1164_s6] sm:$0x3] }
  0x90   :  { %762 = vmatpush1.bf16.msra.mxu1 %v761_v29  ;;  %v378_v29 = vld [vmem:[#allocation7 + $0x108] sm:$0xff]  ;;  %804 = vmatprep.subr.bf16.mxu0 %v803_v26  ;;  %v837_v26 = vpack.c.bf16 %v407_v25, %v405_v24  ;;  %v418_v24 = vrot.slane %v409_v22, %v1135_v9 }
  0x91   :  { %764 = vmatprep.subr.bf16.mxu1 %v763_v30  ;;  %v380_v30 = vld [vmem:[#allocation7 + $0x118] sm:$0xff] }
  0x92   :  { %v807_v32 = vpack.c.bf16 %v380_v30, %v378_v29  ;;  %806 = vmatpush1.bf16.msra.mxu0 %v805_v31  ;;  %v494_v29 = vld [vmem:[#allocation9] sm:$0xff]  ;;  %v839_v30 = vpack.c.bf16 %v511_v28, %v510_v27  ;;  %v495_v31 = vld [vmem:[#allocation9 + $0x8] sm:$0xff] }
  0x93   :  { %v841_v34 = vpack.c.bf16 %v495_v31, %v494_v29 }
  0x94   :  { %766 = vmatpush1.bf16.msra.mxu1 %v765_v35  ;;  %v382_v35 = vld [vmem:[#allocation7 + $0x128] sm:$0xff]  ;;  %808 = vmatprep.subr.bf16.mxu0 %v807_v32  ;;  %v512_v32 = vld [vmem:[#allocation9 + $0x90] sm:$0xff] }
  0x95   :  { %768 = vmatprep.subr.bf16.mxu1 %v767_v36  ;;  %v384_v36 = vld [vmem:[#allocation7 + $0x138] sm:$0xff] }
  0x96   :  { %v811_v38 = vpack.c.bf16 %v384_v36, %v382_v35  ;;  %810 = vmatpush1.bf16.msra.mxu0 %v809_v37  ;;  %v843_v35 = vpack.c.bf16 %v513_v33, %v512_v32  ;;  %v496_v36 = vld [vmem:[#allocation9 + $0x10] sm:$0xff]  ;;  %v497_v37 = vld [vmem:[#allocation9 + $0x18] sm:$0xff]  ;;  %v665_v33 = vld [vmem:[%s1166_s8] ss:$0 sm:$0xff] }
  0x98   :  { %770 = vmatpush1.bf16.msra.mxu1 %v769_v39  ;;  %v381_v39 = vld [vmem:[#allocation7 + $0x120] sm:$0xff]  ;;  %812 = vmatprep.subr.bf16.mxu0 %v811_v38 }
  0x99   :  { %772 = vmatprep.subr.bf16.mxu1 %v771_v42  ;;  %v388_v42 = vld [vmem:[#allocation7 + $0x158] sm:$0xff]  ;;  %v813_v43 = vpack.c.bf16 %v383_v40, %v381_v39  ;;  %v514_v38 = vld [vmem:[#allocation9 + $0xa0] sm:$0xff]  ;;  %v515_v39 = vld [vmem:[#allocation9 + $0xa8] sm:$0xff]  ;;  %v845_v40 = vpack.c.bf16 %v497_v37, %v496_v36 }
  0x9a   :  { %v815_v44 = vpack.c.bf16 %v388_v42, %v386_v41  ;;  %v847_v41 = vpack.c.bf16 %v515_v39, %v514_v38  ;;  %v498_v42 = vld [vmem:[#allocation9 + $0x20] sm:$0xff] }
  0x9b   :  { %814 = vmatpush1.bf16.msra.mxu0 %v813_v43  ;;  %v499_v43 = vld [vmem:[#allocation9 + $0x28] sm:$0xff] }
  0x9c   :  { %774 = vmatpush1.bf16.msra.mxu1 %v773_v45  ;;  %v385_v45 = vld [vmem:[#allocation7 + $0x140] sm:$0xff]  ;;  %816 = vmatprep.subr.bf16.mxu0 %v815_v44  ;;  %v516_v44 = vld [vmem:[#allocation9 + $0xb0] sm:$0xff] }
  0x9d   :  { %v817_v49 = vpack.c.bf16 %v387_v46, %v385_v45  ;;  %840 = vmatprep.subr.bf16.mxu1 %v839_v30  ;;  %v517_v45 = vld [vmem:[#allocation9 + $0xb8] sm:$0xff]  ;;  %v849_v46 = vpack.c.bf16 %v499_v43, %v498_v42 }
  0x9e   :  { %v851_v47 = vpack.c.bf16 %v517_v45, %v516_v44 }
  0x9f   :  { %818 = vmatpush1.bf16.msra.mxu0 %v817_v49  ;;  %v501_v49 = vld [vmem:[#allocation9 + $0x38] sm:$0xff] }
  0xa0   :  { %820 = vmatprep.subr.bf16.mxu0 %v819_v50  ;;  %v518_v50 = vld [vmem:[#allocation9 + $0xc0] sm:$0xff]  ;;  %v853_v52 = vpack.c.bf16 %v501_v49, %v500_v48 }
  0xa1   :  { %v855_v53 = vpack.c.bf16 %v519_v51, %v518_v50 }
  0xa3   :  { %822 = vmatpush1.bf16.msra.mxu0 %v821_v55  ;;  %v503_v55 = vld [vmem:[#allocation9 + $0x48] sm:$0xff] }
  0xa4   :  { %824 = vmatprep.subr.bf16.mxu0 %v823_v56  ;;  %v520_v56 = vld [vmem:[#allocation9 + $0xd0] sm:$0xff]  ;;  %v857_v58 = vpack.c.bf16 %v503_v55, %v502_v54 }
  0xa5   :  { %v859_v59 = vpack.c.bf16 %v521_v57, %v520_v56 }
  0xa7   :  { %826 = vmatpush1.bf16.msra.mxu0 %v825_v61  ;;  %v505_v61 = vld [vmem:[#allocation9 + $0x58] sm:$0xff] }
  0xa8   :  { %828 = vmatprep.subr.bf16.mxu0 %v827_v62  ;;  %v522_v62 = vld [vmem:[#allocation9 + $0xe0] sm:$0xff]  ;;  %v861_v0 = vpack.c.bf16 %v505_v61, %v504_v60 }
  0xa9   :  { %v863_v1 = vpack.c.bf16 %v523_v63, %v522_v62 }
  0xab   :  { %830 = vmatpush1.bf16.msra.mxu0 %v829_v3  ;;  %v265_v3 = vrot.slane %v260_v2, %v1130_v7 }
  0xac   :  { %832 = vmatprep.subr.bf16.mxu0 %v831_v4  ;;  %v269_v4 = vrot.slane %v260_v2, %v1135_v9 }
  0xaf   :  { %834 = vmatpush1.bf16.msra.mxu0 %v833_v20  ;;  %v509_v20 = vld [vmem:[#allocation9 + $0x78] sm:$0xff] }
  0xb0   :  { %836 = vmatprep.subr.bf16.mxu0 %v835_v23  ;;  %v869_v21 = vpack.c.bf16 %v509_v20, %v508_v19  ;;  %v414_v23 = vrot.slane %v409_v22, %v1130_v7 }
  0xb3   :  { %838 = vmatpush1.bf16.msra.mxu0 %v837_v26 }
 0x137   :  { %v189_v12 = vpop.f32.mrb[0].mxu0 }
 0x138   :  { %v190_v13 = vadd.f32 %v189_v12, %v112_v10  ;;  %v191_v14 = vpop.f32.mrb[1].mxu0 }
 0x139   :  { %v192_v15 = vadd.f32 %v191_v14, %v116_v11  ;;  %v507_v14 = vld [vmem:[#allocation9 + $0x68] sm:$0xff] }
 0x13a   :  { %v194_v17 = vmax.f32 %v190_v13, 0.0  ;;  %v506_v13 = vld [vmem:[#allocation9 + $0x60] sm:$0xff] }
 0x13b   :  { %v195_v16 = vmax.f32 %v192_v15, 0.0  ;;  %v865_v15 = vpack.c.bf16 %v507_v14, %v506_v13 }
 0x13d   :  { %336 = vmatprep.mubr.f32.mxu1 %v195_v16  ;;  %v524_v16 = vld [vmem:[#allocation9 + $0xf0] sm:$0xff] }
 0x13e   :  { %337 = vmatmul.mubr.f32.vlgmr.msra.gmra.mrb[0].mxu1 %v194_v17  ;;  %v525_v17 = vld [vmem:[#allocation9 + $0xf8] sm:$0xff] }
 0x13f   :  { %842 = vmatpush3.bf16.msra.mxu1 %v841_v34  ;;  %v867_v18 = vpack.c.bf16 %v525_v17, %v524_v16 }
 0x140   :  { %844 = vmatprep.subr.bf16.mxu1 %v843_v35 }
 0x143   :  { %846 = vmatpush3.bf16.msra.mxu1 %v845_v40 }
 0x144   :  { %848 = vmatprep.subr.bf16.mxu1 %v847_v41 }
 0x147   :  { %850 = vmatpush3.bf16.msra.mxu1 %v849_v46 }
 0x148   :  { %852 = vmatprep.subr.bf16.mxu1 %v851_v47 }
 0x14b   :  { %854 = vmatpush3.bf16.msra.mxu1 %v853_v52 }
 0x14c   :  { %856 = vmatprep.subr.bf16.mxu1 %v855_v53 }
 0x14f   :  { %858 = vmatpush3.bf16.msra.mxu1 %v857_v58 }
 0x150   :  { %860 = vmatprep.subr.bf16.mxu1 %v859_v59 }
 0x153   :  { %862 = vmatpush3.bf16.msra.mxu1 %v861_v0 }
 0x154   :  { %864 = vmatprep.subr.bf16.mxu1 %v863_v1 }
 0x157   :  { %866 = vmatpush3.bf16.msra.mxu1 %v865_v15 }
 0x158   :  { %868 = vmatprep.subr.bf16.mxu1 %v867_v18 }
 0x15b   :  { %870 = vmatpush3.bf16.msra.mxu1 %v869_v21 }
 0x211   :  { %v338_v5 = vpop.f32.mrb[0].mxu1 }
 0x212   :  { %v339_v6 = vadd.f32 %v338_v5, %v265_v3  ;;  %v340_v8 = vpop.f32.mrb[1].mxu1 }
 0x213   :  { %v341_v10 = vadd.f32 %v340_v8, %v269_v4 }
 0x214   :  { %v343_v12 = vmax.f32 %v339_v6, 0.0 }
 0x215   :  { %v344_v11 = vmax.f32 %v341_v10, 0.0 }
 0x217   :  { %485 = vmatprep.mubr.f32.mxu0 %v344_v11 }
 0x218   :  { %486 = vmatmul.mubr.f32.vlgmr.msra.gmra.mrb[2].mxu0 %v343_v12 }
 0x2eb   :  { %v487_v25 = vpop.f32.mrb[2].mxu0 }
 0x2ec   :  { %v488_v26 = vadd.f32 %v487_v25, %v414_v23  ;;  %v489_v27 = vpop.f32.mrb[3].mxu0 }
 0x2ed   :  { %v490_v28 = vadd.f32 %v489_v27, %v418_v24 }
 0x2ee   :  { %v492_v30 = vmax.f32 %v488_v26, 0.0 }
 0x2ef   :  { %v493_v29 = vmax.f32 %v490_v28, 0.0 }
 0x2f1   :  { %597 = vmatprep.mubr.f32.mxu1 %v493_v29 }
 0x2f2   :  { %598 = vmatmul.mubr.f32.vlgmr.msra.gmra.mrb[2].mxu1 %v492_v30 }
 0x3c5   :  { %v700_v31 = vpop.f32.mrb[2].mxu1 }
 0x3c6   :  { %v701_v32 = vpop.f32.mrb[3].mxu1 }
 0x3c7   :  { %v702_v34 = vadd.f32 %v701_v32, %v700_v31 }
 0x3c9   :  { %v600_v35 = vadd.f32 %v702_v34, %v665_v33 }
 0x3cb   :  { %603 = vxpose.xlu0.b32.start.end [1/1] (short) (narrow) %v600_v35, 16 }
 0x44b   :  { %v619_v7 = vpop.trf.xlu0 }
 0x44c   :  { %v666_v36 = vmul.f32 -1.442695, %v619_v7 }
 0x44e   :  { %881 = vpow2.f32 %v666_v36 }
 0x44f   :  { %v620_v9 = vpop.trf.xlu0 }
 0x450   :  { %656 = vst.msk [vmem:[%s1167_s9 + $0x8] sm:$0xff] %vm654_vm1, %v620_v9 }
 0x458   :  { %v882_v37 = vpop.eup %881 }
 0x459   :  { %v646_v38 = vadd.f32 1.0, %v882_v37 }
 0x45b   :  { %883 = vrcp.f32 %v646_v38 }
 0x465   :  { %v884_v39 = vpop.eup %883 }
 0x466   :  { %655 = vst.msk [vmem:[%s1167_s9] sm:$0xff] %vm654_vm1, %v884_v39 }
 0x467   :  { %661 = vsyncpa [#allocation3], 1 }
 0x468   :  { %662 = vsyncpa [#allocation5], 1 }
 0x469   :  { %663 = vsyncpa [#allocation8], 1 }

</bundles_post_ra>
